<compile_context>
chip_gen: v5e
topology: v5e:2x2
jax: 0.10.0
libtpu: 0.0.40
codegen_flags: <defaults>
</compile_context>

<pallas_src>
import jax
import jax.numpy as jnp
from jax.experimental import pallas as pl
from jax.experimental.pallas import tpu as pltpu

INPUT_SIZE = 5
HIDDEN_SIZE = 32          # 4H = 128 lanes = exactly one vreg lane width
NUM_LAYERS = 2
OUTPUT_SIZE = 4
BATCH = 2
SEQ = 8


def lstm_kernel(x_ref, *refs):
    """refs = [wih_l0, whh_l0, b_l0, ..., wih_l{L-1}, whh_l{L-1}, b_l{L-1}, w_fc, b_fc, out_ref]."""
    n_layer_refs = 3 * NUM_LAYERS
    layer_refs = refs[:n_layer_refs]
    wfc_ref = refs[n_layer_refs]
    bfc_ref = refs[n_layer_refs + 1]
    out_ref = refs[n_layer_refs + 2]

    H = HIDDEN_SIZE
    G = 4 * H
    B = out_ref.shape[0]
    T = x_ref.shape[0] // B

    # Lane mask for the 'g' (cell-candidate) gate quarter [2H, 3H) -- hoisted once.
    lane = jax.lax.broadcasted_iota(jnp.int32, (B, G), 1)
    g_mask = jnp.logical_and(lane >= 2 * H, lane < 3 * H)

    def lstm_cell(pre, h, c, whh):
        # pre = x_t @ W_ih + b (precomputed) -> only the recurrent matmul is on the serial chain.
        gates = pre + jnp.dot(h, whh, preferred_element_type=jnp.float32)      # (B, 4H)
        # Whole-vreg activation: sigmoid everywhere, tanh on the g quarter (PyTorch gate order i,f,g,o).
        a = jnp.where(g_mask, jnp.tanh(gates), jax.nn.sigmoid(gates))
        i_g = a[:, 0:H]
        f_g = a[:, H:2 * H]
        g_g = a[:, 2 * H:3 * H]
        o_g = a[:, 3 * H:4 * H]
        c_new = f_g * c + i_g * g_g
        h_new = o_g * jnp.tanh(c_new)
        return h_new, c_new

    # ---- layer 0: hoisted input projection for ALL timesteps in one MXU call ----
    # x_ref is (T*B, input), time-major: rows [t*B, (t+1)*B) belong to step t.
    xproj = (jnp.dot(x_ref[...], layer_refs[0][...], preferred_element_type=jnp.float32)
             + layer_refs[2][...])                                             # (T*B, 4H)
    pre = [xproj[t * B:(t + 1) * B, :] for t in range(T)]

    h_last = None
    for l in range(NUM_LAYERS):
        whh = layer_refs[3 * l + 1][...]                                       # (H, 4H)
        has_next = l + 1 < NUM_LAYERS
        if has_next:
            wih_next = layer_refs[3 * (l + 1)][...]                            # (H, 4H)
            b_next = jnp.broadcast_to(layer_refs[3 * (l + 1) + 2][...], (B, G))  # broadcast hoisted
        h = jnp.zeros((B, H), jnp.float32)   # h0 = 0, matching torch.zeros in forward()
        c = jnp.zeros((B, H), jnp.float32)   # c0 = 0
        next_pre = []
        for t in range(T):
            h, c = lstm_cell(pre[t], h, c, whh)
            if has_next:
                # Issue layer l+1's input projection for step t as soon as h_t exists, so the
                # layer-(l+1) recurrence can overlap with the remainder of this layer.
                next_pre.append(
                    jnp.dot(h, wih_next, preferred_element_type=jnp.float32) + b_next)
        pre = next_pre
        h_last = h

    # fc(out[:, -1, :]) followed by sigmoid
    logits = jnp.dot(h_last, wfc_ref[...], preferred_element_type=jnp.float32) + bfc_ref[...]
    out_ref[...] = jax.nn.sigmoid(logits)


def lstm_forward(x, params):
    B, T, F = x.shape
    # Time-major contiguous 2-D slab feeding the hoisted layer-0 projection (layout plumbing
    # done in the wrapper, free in XLA; avoids per-step relayouts inside the kernel).
    x2d = jnp.transpose(x, (1, 0, 2)).reshape(T * B, F)
    vmem = pl.BlockSpec(memory_space=pltpu.MemorySpace.VMEM)
    return pl.pallas_call(
        lstm_kernel,
        out_shape=jax.ShapeDtypeStruct((B, OUTPUT_SIZE), jnp.float32),
        in_specs=[vmem] * (1 + len(params)),
        out_specs=vmem,
    )(x2d, *params)


def init_params(key):
    """Deterministic init mimicking PyTorch's uniform(-1/sqrt(H), 1/sqrt(H)).
    Weights stored pre-transposed: wih (in,4H), whh (H,4H), b=(b_ih+b_hh) (1,4H),
    w_fc (H,O), b_fc (1,O)."""
    params = []
    k = 1.0 / float(jnp.sqrt(jnp.float32(HIDDEN_SIZE)))
    keys = jax.random.split(key, NUM_LAYERS * 4 + 2)
    idx = 0
    for l in range(NUM_LAYERS):
        in_sz = INPUT_SIZE if l == 0 else HIDDEN_SIZE
        w_ih = jax.random.uniform(keys[idx], (4 * HIDDEN_SIZE, in_sz), minval=-k, maxval=k); idx += 1
        w_hh = jax.random.uniform(keys[idx], (4 * HIDDEN_SIZE, HIDDEN_SIZE), minval=-k, maxval=k); idx += 1
        b_ih = jax.random.uniform(keys[idx], (4 * HIDDEN_SIZE,), minval=-k, maxval=k); idx += 1
        b_hh = jax.random.uniform(keys[idx], (4 * HIDDEN_SIZE,), minval=-k, maxval=k); idx += 1
        params += [w_ih.T, w_hh.T, (b_ih + b_hh).reshape(1, -1)]
    w_fc = jax.random.uniform(keys[idx], (OUTPUT_SIZE, HIDDEN_SIZE), minval=-k, maxval=k); idx += 1
    b_fc = jax.random.uniform(keys[idx], (OUTPUT_SIZE,), minval=-k, maxval=k)
    params += [w_fc.T, b_fc.reshape(1, -1)]
    return [p.astype(jnp.float32) for p in params]


def reference_forward(x, params):
    """Pure-JAX reference of the same forward pass (for correctness check)."""
    H = HIDDEN_SIZE
    B, T, _ = x.shape
    seq = [x[:, t, :] for t in range(T)]
    for l in range(NUM_LAYERS):
        wih, whh, b = params[3 * l], params[3 * l + 1], params[3 * l + 2]
        h = jnp.zeros((B, H), jnp.float32)
        c = jnp.zeros((B, H), jnp.float32)
        new_seq = []
        for t in range(T):
            gates = seq[t] @ wih + h @ whh + b
            i_g = jax.nn.sigmoid(gates[:, 0:H])
            f_g = jax.nn.sigmoid(gates[:, H:2 * H])
            g_g = jnp.tanh(gates[:, 2 * H:3 * H])
            o_g = jax.nn.sigmoid(gates[:, 3 * H:4 * H])
            c = f_g * c + i_g * g_g
            h = o_g * jnp.tanh(c)
            new_seq.append(h)
        seq = new_seq
    w_fc, b_fc = params[3 * NUM_LAYERS], params[3 * NUM_LAYERS + 1]
    return jax.nn.sigmoid(seq[-1] @ w_fc + b_fc)


if __name__ == "__main__":
    key = jax.random.PRNGKey(0)
    kx, kp = jax.random.split(key)
    x = jax.random.normal(kx, (BATCH, SEQ, INPUT_SIZE), dtype=jnp.float32)
    params = init_params(kp)

    out = lstm_forward(x, params)
    out = jax.block_until_ready(out)

    ref = reference_forward(x, params)
    assert out.shape == (BATCH, OUTPUT_SIZE)
    assert jnp.allclose(out, ref, rtol=1e-5, atol=1e-5), (out, ref)
    print("KERNEL_OK")
</pallas_src>

<mosaic_0001>
module attributes {stable_mosaic.version = 11 : i64} {
  func.func @lstm_kernel(%arg0: memref<16x5xf32, #tpu.memory_space<vmem>>, %arg1: memref<5x128xf32, #tpu.memory_space<vmem>>, %arg2: memref<32x128xf32, #tpu.memory_space<vmem>>, %arg3: memref<1x128xf32, #tpu.memory_space<vmem>>, %arg4: memref<32x128xf32, #tpu.memory_space<vmem>>, %arg5: memref<32x128xf32, #tpu.memory_space<vmem>>, %arg6: memref<1x128xf32, #tpu.memory_space<vmem>>, %arg7: memref<32x4xf32, #tpu.memory_space<vmem>>, %arg8: memref<1x4xf32, #tpu.memory_space<vmem>>, %arg9: memref<2x4xf32, #tpu.memory_space<vmem>>) attributes {dimension_semantics = [], scalar_prefetch = 0 : i64, scratch_operands = 0 : i64, tpu.core_type = #tpu.core_type<tc>} {
    %0 = tpu.iota {dimensions = array<i32: 1>} : vector<2x128xi32>
    %c64_i32 = arith.constant 64 : i32
    %1 = vector.broadcast %c64_i32 : i32 to vector<2x128xi32>
    %2 = arith.cmpi sge, %0, %1 : vector<2x128xi32>
    %c96_i32 = arith.constant 96 : i32
    %3 = vector.broadcast %c96_i32 : i32 to vector<2x128xi32>
    %4 = arith.cmpi slt, %0, %3 : vector<2x128xi32>
    %5 = arith.andi %2, %4 : vector<2x128xi1>
    %c0 = arith.constant 0 : index
    %c0_0 = arith.constant 0 : index
    %6 = vector.load %arg0[%c0, %c0_0] : memref<16x5xf32, #tpu.memory_space<vmem>>, vector<16x5xf32>
    %c0_1 = arith.constant 0 : index
    %c0_2 = arith.constant 0 : index
    %7 = vector.load %arg1[%c0_1, %c0_2] : memref<5x128xf32, #tpu.memory_space<vmem>>, vector<5x128xf32>
    %cst = arith.constant dense<0.000000e+00> : vector<16x128xf32>
    %8 = tpu.matmul %6, %7, %cst {dimension_numbers = #tpu.dot_dimension_numbers<[1], [0], [0], [1], [0, 0, 1, 1], [], []>} : vector<16x5xf32>, vector<5x128xf32>, vector<16x128xf32> -> vector<16x128xf32>
    %c0_3 = arith.constant 0 : index
    %c0_4 = arith.constant 0 : index
    %9 = vector.load %arg3[%c0_3, %c0_4] : memref<1x128xf32, #tpu.memory_space<vmem>>, vector<1x128xf32>
    %10 = vector.broadcast %9 : vector<1x128xf32> to vector<16x128xf32>
    %11 = arith.addf %8, %10 : vector<16x128xf32>
    %12 = vector.extract_strided_slice %11 {offsets = [0, 0], sizes = [2, 128], strides = [1, 1]} : vector<16x128xf32> to vector<2x128xf32>
    %13 = vector.extract_strided_slice %11 {offsets = [2, 0], sizes = [2, 128], strides = [1, 1]} : vector<16x128xf32> to vector<2x128xf32>
    %14 = vector.extract_strided_slice %11 {offsets = [4, 0], sizes = [2, 128], strides = [1, 1]} : vector<16x128xf32> to vector<2x128xf32>
    %15 = vector.extract_strided_slice %11 {offsets = [6, 0], sizes = [2, 128], strides = [1, 1]} : vector<16x128xf32> to vector<2x128xf32>
    %16 = vector.extract_strided_slice %11 {offsets = [8, 0], sizes = [2, 128], strides = [1, 1]} : vector<16x128xf32> to vector<2x128xf32>
    %17 = vector.extract_strided_slice %11 {offsets = [10, 0], sizes = [2, 128], strides = [1, 1]} : vector<16x128xf32> to vector<2x128xf32>
    %18 = vector.extract_strided_slice %11 {offsets = [12, 0], sizes = [2, 128], strides = [1, 1]} : vector<16x128xf32> to vector<2x128xf32>
    %19 = vector.extract_strided_slice %11 {offsets = [14, 0], sizes = [2, 128], strides = [1, 1]} : vector<16x128xf32> to vector<2x128xf32>
    %c0_5 = arith.constant 0 : index
    %c0_6 = arith.constant 0 : index
    %20 = vector.load %arg2[%c0_5, %c0_6] : memref<32x128xf32, #tpu.memory_space<vmem>>, vector<32x128xf32>
    %c0_7 = arith.constant 0 : index
    %c0_8 = arith.constant 0 : index
    %21 = vector.load %arg4[%c0_7, %c0_8] : memref<32x128xf32, #tpu.memory_space<vmem>>, vector<32x128xf32>
    %c0_9 = arith.constant 0 : index
    %c0_10 = arith.constant 0 : index
    %22 = vector.load %arg6[%c0_9, %c0_10] : memref<1x128xf32, #tpu.memory_space<vmem>>, vector<1x128xf32>
    %23 = vector.shape_cast %22 : vector<1x128xf32> to vector<1x128xf32>
    %24 = vector.broadcast %23 : vector<1x128xf32> to vector<2x128xf32>
    %cst_11 = arith.constant 0.000000e+00 : f32
    %25 = vector.broadcast %cst_11 : f32 to vector<2x32xf32>
    %cst_12 = arith.constant 0.000000e+00 : f32
    %26 = vector.broadcast %cst_12 : f32 to vector<2x32xf32>
    %cst_13 = arith.constant dense<0.000000e+00> : vector<2x128xf32>
    %27 = tpu.matmul %25, %20, %cst_13 {dimension_numbers = #tpu.dot_dimension_numbers<[1], [0], [0], [1], [0, 0, 1, 1], [], []>} : vector<2x32xf32>, vector<32x128xf32>, vector<2x128xf32> -> vector<2x128xf32>
    %28 = arith.addf %12, %27 : vector<2x128xf32>
    %29 = math.tanh %28 : vector<2x128xf32>
    %30 = arith.negf %28 : vector<2x128xf32>
    %31 = math.exp %30 : vector<2x128xf32>
    %cst_14 = arith.constant 1.000000e+00 : f32
    %32 = vector.broadcast %cst_14 : f32 to vector<2x128xf32>
    %33 = arith.addf %32, %31 : vector<2x128xf32>
    %34 = arith.divf %32, %33 : vector<2x128xf32>
    %35 = arith.select %5, %29, %34 : vector<2x128xi1>, vector<2x128xf32>
    %36 = vector.extract_strided_slice %35 {offsets = [0, 0], sizes = [2, 32], strides = [1, 1]} : vector<2x128xf32> to vector<2x32xf32>
    %37 = vector.extract_strided_slice %35 {offsets = [0, 32], sizes = [2, 32], strides = [1, 1]} : vector<2x128xf32> to vector<2x32xf32>
    %38 = vector.extract_strided_slice %35 {offsets = [0, 64], sizes = [2, 32], strides = [1, 1]} : vector<2x128xf32> to vector<2x32xf32>
    %39 = vector.extract_strided_slice %35 {offsets = [0, 96], sizes = [2, 32], strides = [1, 1]} : vector<2x128xf32> to vector<2x32xf32>
    %40 = arith.mulf %37, %26 : vector<2x32xf32>
    %41 = arith.mulf %36, %38 : vector<2x32xf32>
    %42 = arith.addf %40, %41 : vector<2x32xf32>
    %43 = math.tanh %42 : vector<2x32xf32>
    %44 = arith.mulf %39, %43 : vector<2x32xf32>
    %cst_15 = arith.constant dense<0.000000e+00> : vector<2x128xf32>
    %45 = tpu.matmul %44, %21, %cst_15 {dimension_numbers = #tpu.dot_dimension_numbers<[1], [0], [0], [1], [0, 0, 1, 1], [], []>} : vector<2x32xf32>, vector<32x128xf32>, vector<2x128xf32> -> vector<2x128xf32>
    %46 = arith.addf %45, %24 : vector<2x128xf32>
    %cst_16 = arith.constant dense<0.000000e+00> : vector<2x128xf32>
    %47 = tpu.matmul %44, %20, %cst_16 {dimension_numbers = #tpu.dot_dimension_numbers<[1], [0], [0], [1], [0, 0, 1, 1], [], []>} : vector<2x32xf32>, vector<32x128xf32>, vector<2x128xf32> -> vector<2x128xf32>
    %48 = arith.addf %13, %47 : vector<2x128xf32>
    %49 = math.tanh %48 : vector<2x128xf32>
    %50 = arith.negf %48 : vector<2x128xf32>
    %51 = math.exp %50 : vector<2x128xf32>
    %cst_17 = arith.constant 1.000000e+00 : f32
    %52 = vector.broadcast %cst_17 : f32 to vector<2x128xf32>
    %53 = arith.addf %52, %51 : vector<2x128xf32>
    %54 = arith.divf %52, %53 : vector<2x128xf32>
    %55 = arith.select %5, %49, %54 : vector<2x128xi1>, vector<2x128xf32>
    %56 = vector.extract_strided_slice %55 {offsets = [0, 0], sizes = [2, 32], strides = [1, 1]} : vector<2x128xf32> to vector<2x32xf32>
    %57 = vector.extract_strided_slice %55 {offsets = [0, 32], sizes = [2, 32], strides = [1, 1]} : vector<2x128xf32> to vector<2x32xf32>
    %58 = vector.extract_strided_slice %55 {offsets = [0, 64], sizes = [2, 32], strides = [1, 1]} : vector<2x128xf32> to vector<2x32xf32>
    %59 = vector.extract_strided_slice %55 {offsets = [0, 96], sizes = [2, 32], strides = [1, 1]} : vector<2x128xf32> to vector<2x32xf32>
    %60 = arith.mulf %57, %42 : vector<2x32xf32>
    %61 = arith.mulf %56, %58 : vector<2x32xf32>
    %62 = arith.addf %60, %61 : vector<2x32xf32>
    %63 = math.tanh %62 : vector<2x32xf32>
    %64 = arith.mulf %59, %63 : vector<2x32xf32>
    %cst_18 = arith.constant dense<0.000000e+00> : vector<2x128xf32>
    %65 = tpu.matmul %64, %21, %cst_18 {dimension_numbers = #tpu.dot_dimension_numbers<[1], [0], [0], [1], [0, 0, 1, 1], [], []>} : vector<2x32xf32>, vector<32x128xf32>, vector<2x128xf32> -> vector<2x128xf32>
    %66 = arith.addf %65, %24 : vector<2x128xf32>
    %cst_19 = arith.constant dense<0.000000e+00> : vector<2x128xf32>
    %67 = tpu.matmul %64, %20, %cst_19 {dimension_numbers = #tpu.dot_dimension_numbers<[1], [0], [0], [1], [0, 0, 1, 1], [], []>} : vector<2x32xf32>, vector<32x128xf32>, vector<2x128xf32> -> vector<2x128xf32>
    %68 = arith.addf %14, %67 : vector<2x128xf32>
    %69 = math.tanh %68 : vector<2x128xf32>
    %70 = arith.negf %68 : vector<2x128xf32>
    %71 = math.exp %70 : vector<2x128xf32>
    %cst_20 = arith.constant 1.000000e+00 : f32
    %72 = vector.broadcast %cst_20 : f32 to vector<2x128xf32>
    %73 = arith.addf %72, %71 : vector<2x128xf32>
    %74 = arith.divf %72, %73 : vector<2x128xf32>
    %75 = arith.select %5, %69, %74 : vector<2x128xi1>, vector<2x128xf32>
    %76 = vector.extract_strided_slice %75 {offsets = [0, 0], sizes = [2, 32], strides = [1, 1]} : vector<2x128xf32> to vector<2x32xf32>
    %77 = vector.extract_strided_slice %75 {offsets = [0, 32], sizes = [2, 32], strides = [1, 1]} : vector<2x128xf32> to vector<2x32xf32>
    %78 = vector.extract_strided_slice %75 {offsets = [0, 64], sizes = [2, 32], strides = [1, 1]} : vector<2x128xf32> to vector<2x32xf32>
    %79 = vector.extract_strided_slice %75 {offsets = [0, 96], sizes = [2, 32], strides = [1, 1]} : vector<2x128xf32> to vector<2x32xf32>
    %80 = arith.mulf %77, %62 : vector<2x32xf32>
    %81 = arith.mulf %76, %78 : vector<2x32xf32>
    %82 = arith.addf %80, %81 : vector<2x32xf32>
    %83 = math.tanh %82 : vector<2x32xf32>
    %84 = arith.mulf %79, %83 : vector<2x32xf32>
    %cst_21 = arith.constant dense<0.000000e+00> : vector<2x128xf32>
    %85 = tpu.matmul %84, %21, %cst_21 {dimension_numbers = #tpu.dot_dimension_numbers<[1], [0], [0], [1], [0, 0, 1, 1], [], []>} : vector<2x32xf32>, vector<32x128xf32>, vector<2x128xf32> -> vector<2x128xf32>
    %86 = arith.addf %85, %24 : vector<2x128xf32>
    %cst_22 = arith.constant dense<0.000000e+00> : vector<2x128xf32>
    %87 = tpu.matmul %84, %20, %cst_22 {dimension_numbers = #tpu.dot_dimension_numbers<[1], [0], [0], [1], [0, 0, 1, 1], [], []>} : vector<2x32xf32>, vector<32x128xf32>, vector<2x128xf32> -> vector<2x128xf32>
    %88 = arith.addf %15, %87 : vector<2x128xf32>
    %89 = math.tanh %88 : vector<2x128xf32>
    %90 = arith.negf %88 : vector<2x128xf32>
    %91 = math.exp %90 : vector<2x128xf32>
    %cst_23 = arith.constant 1.000000e+00 : f32
    %92 = vector.broadcast %cst_23 : f32 to vector<2x128xf32>
    %93 = arith.addf %92, %91 : vector<2x128xf32>
    %94 = arith.divf %92, %93 : vector<2x128xf32>
    %95 = arith.select %5, %89, %94 : vector<2x128xi1>, vector<2x128xf32>
    %96 = vector.extract_strided_slice %95 {offsets = [0, 0], sizes = [2, 32], strides = [1, 1]} : vector<2x128xf32> to vector<2x32xf32>
    %97 = vector.extract_strided_slice %95 {offsets = [0, 32], sizes = [2, 32], strides = [1, 1]} : vector<2x128xf32> to vector<2x32xf32>
    %98 = vector.extract_strided_slice %95 {offsets = [0, 64], sizes = [2, 32], strides = [1, 1]} : vector<2x128xf32> to vector<2x32xf32>
    %99 = vector.extract_strided_slice %95 {offsets = [0, 96], sizes = [2, 32], strides = [1, 1]} : vector<2x128xf32> to vector<2x32xf32>
    %100 = arith.mulf %97, %82 : vector<2x32xf32>
    %101 = arith.mulf %96, %98 : vector<2x32xf32>
    %102 = arith.addf %100, %101 : vector<2x32xf32>
    %103 = math.tanh %102 : vector<2x32xf32>
    %104 = arith.mulf %99, %103 : vector<2x32xf32>
    %cst_24 = arith.constant dense<0.000000e+00> : vector<2x128xf32>
    %105 = tpu.matmul %104, %21, %cst_24 {dimension_numbers = #tpu.dot_dimension_numbers<[1], [0], [0], [1], [0, 0, 1, 1], [], []>} : vector<2x32xf32>, vector<32x128xf32>, vector<2x128xf32> -> vector<2x128xf32>
    %106 = arith.addf %105, %24 : vector<2x128xf32>
    %cst_25 = arith.constant dense<0.000000e+00> : vector<2x128xf32>
    %107 = tpu.matmul %104, %20, %cst_25 {dimension_numbers = #tpu.dot_dimension_numbers<[1], [0], [0], [1], [0, 0, 1, 1], [], []>} : vector<2x32xf32>, vector<32x128xf32>, vector<2x128xf32> -> vector<2x128xf32>
    %108 = arith.addf %16, %107 : vector<2x128xf32>
    %109 = math.tanh %108 : vector<2x128xf32>
    %110 = arith.negf %108 : vector<2x128xf32>
    %111 = math.exp %110 : vector<2x128xf32>
    %cst_26 = arith.constant 1.000000e+00 : f32
    %112 = vector.broadcast %cst_26 : f32 to vector<2x128xf32>
    %113 = arith.addf %112, %111 : vector<2x128xf32>
    %114 = arith.divf %112, %113 : vector<2x128xf32>
    %115 = arith.select %5, %109, %114 : vector<2x128xi1>, vector<2x128xf32>
    %116 = vector.extract_strided_slice %115 {offsets = [0, 0], sizes = [2, 32], strides = [1, 1]} : vector<2x128xf32> to vector<2x32xf32>
    %117 = vector.extract_strided_slice %115 {offsets = [0, 32], sizes = [2, 32], strides = [1, 1]} : vector<2x128xf32> to vector<2x32xf32>
    %118 = vector.extract_strided_slice %115 {offsets = [0, 64], sizes = [2, 32], strides = [1, 1]} : vector<2x128xf32> to vector<2x32xf32>
    %119 = vector.extract_strided_slice %115 {offsets = [0, 96], sizes = [2, 32], strides = [1, 1]} : vector<2x128xf32> to vector<2x32xf32>
    %120 = arith.mulf %117, %102 : vector<2x32xf32>
    %121 = arith.mulf %116, %118 : vector<2x32xf32>
    %122 = arith.addf %120, %121 : vector<2x32xf32>
    %123 = math.tanh %122 : vector<2x32xf32>
    %124 = arith.mulf %119, %123 : vector<2x32xf32>
    %cst_27 = arith.constant dense<0.000000e+00> : vector<2x128xf32>
    %125 = tpu.matmul %124, %21, %cst_27 {dimension_numbers = #tpu.dot_dimension_numbers<[1], [0], [0], [1], [0, 0, 1, 1], [], []>} : vector<2x32xf32>, vector<32x128xf32>, vector<2x128xf32> -> vector<2x128xf32>
    %126 = arith.addf %125, %24 : vector<2x128xf32>
    %cst_28 = arith.constant dense<0.000000e+00> : vector<2x128xf32>
    %127 = tpu.matmul %124, %20, %cst_28 {dimension_numbers = #tpu.dot_dimension_numbers<[1], [0], [0], [1], [0, 0, 1, 1], [], []>} : vector<2x32xf32>, vector<32x128xf32>, vector<2x128xf32> -> vector<2x128xf32>
    %128 = arith.addf %17, %127 : vector<2x128xf32>
    %129 = math.tanh %128 : vector<2x128xf32>
    %130 = arith.negf %128 : vector<2x128xf32>
    %131 = math.exp %130 : vector<2x128xf32>
    %cst_29 = arith.constant 1.000000e+00 : f32
    %132 = vector.broadcast %cst_29 : f32 to vector<2x128xf32>
    %133 = arith.addf %132, %131 : vector<2x128xf32>
    %134 = arith.divf %132, %133 : vector<2x128xf32>
    %135 = arith.select %5, %129, %134 : vector<2x128xi1>, vector<2x128xf32>
    %136 = vector.extract_strided_slice %135 {offsets = [0, 0], sizes = [2, 32], strides = [1, 1]} : vector<2x128xf32> to vector<2x32xf32>
    %137 = vector.extract_strided_slice %135 {offsets = [0, 32], sizes = [2, 32], strides = [1, 1]} : vector<2x128xf32> to vector<2x32xf32>
    %138 = vector.extract_strided_slice %135 {offsets = [0, 64], sizes = [2, 32], strides = [1, 1]} : vector<2x128xf32> to vector<2x32xf32>
    %139 = vector.extract_strided_slice %135 {offsets = [0, 96], sizes = [2, 32], strides = [1, 1]} : vector<2x128xf32> to vector<2x32xf32>
    %140 = arith.mulf %137, %122 : vector<2x32xf32>
    %141 = arith.mulf %136, %138 : vector<2x32xf32>
    %142 = arith.addf %140, %141 : vector<2x32xf32>
    %143 = math.tanh %142 : vector<2x32xf32>
    %144 = arith.mulf %139, %143 : vector<2x32xf32>
    %cst_30 = arith.constant dense<0.000000e+00> : vector<2x128xf32>
    %145 = tpu.matmul %144, %21, %cst_30 {dimension_numbers = #tpu.dot_dimension_numbers<[1], [0], [0], [1], [0, 0, 1, 1], [], []>} : vector<2x32xf32>, vector<32x128xf32>, vector<2x128xf32> -> vector<2x128xf32>
    %146 = arith.addf %145, %24 : vector<2x128xf32>
    %cst_31 = arith.constant dense<0.000000e+00> : vector<2x128xf32>
    %147 = tpu.matmul %144, %20, %cst_31 {dimension_numbers = #tpu.dot_dimension_numbers<[1], [0], [0], [1], [0, 0, 1, 1], [], []>} : vector<2x32xf32>, vector<32x128xf32>, vector<2x128xf32> -> vector<2x128xf32>
    %148 = arith.addf %18, %147 : vector<2x128xf32>
    %149 = math.tanh %148 : vector<2x128xf32>
    %150 = arith.negf %148 : vector<2x128xf32>
    %151 = math.exp %150 : vector<2x128xf32>
    %cst_32 = arith.constant 1.000000e+00 : f32
    %152 = vector.broadcast %cst_32 : f32 to vector<2x128xf32>
    %153 = arith.addf %152, %151 : vector<2x128xf32>
    %154 = arith.divf %152, %153 : vector<2x128xf32>
    %155 = arith.select %5, %149, %154 : vector<2x128xi1>, vector<2x128xf32>
    %156 = vector.extract_strided_slice %155 {offsets = [0, 0], sizes = [2, 32], strides = [1, 1]} : vector<2x128xf32> to vector<2x32xf32>
    %157 = vector.extract_strided_slice %155 {offsets = [0, 32], sizes = [2, 32], strides = [1, 1]} : vector<2x128xf32> to vector<2x32xf32>
    %158 = vector.extract_strided_slice %155 {offsets = [0, 64], sizes = [2, 32], strides = [1, 1]} : vector<2x128xf32> to vector<2x32xf32>
    %159 = vector.extract_strided_slice %155 {offsets = [0, 96], sizes = [2, 32], strides = [1, 1]} : vector<2x128xf32> to vector<2x32xf32>
    %160 = arith.mulf %157, %142 : vector<2x32xf32>
    %161 = arith.mulf %156, %158 : vector<2x32xf32>
    %162 = arith.addf %160, %161 : vector<2x32xf32>
    %163 = math.tanh %162 : vector<2x32xf32>
    %164 = arith.mulf %159, %163 : vector<2x32xf32>
    %cst_33 = arith.constant dense<0.000000e+00> : vector<2x128xf32>
    %165 = tpu.matmul %164, %21, %cst_33 {dimension_numbers = #tpu.dot_dimension_numbers<[1], [0], [0], [1], [0, 0, 1, 1], [], []>} : vector<2x32xf32>, vector<32x128xf32>, vector<2x128xf32> -> vector<2x128xf32>
    %166 = arith.addf %165, %24 : vector<2x128xf32>
    %cst_34 = arith.constant dense<0.000000e+00> : vector<2x128xf32>
    %167 = tpu.matmul %164, %20, %cst_34 {dimension_numbers = #tpu.dot_dimension_numbers<[1], [0], [0], [1], [0, 0, 1, 1], [], []>} : vector<2x32xf32>, vector<32x128xf32>, vector<2x128xf32> -> vector<2x128xf32>
    %168 = arith.addf %19, %167 : vector<2x128xf32>
    %169 = math.tanh %168 : vector<2x128xf32>
    %170 = arith.negf %168 : vector<2x128xf32>
    %171 = math.exp %170 : vector<2x128xf32>
    %cst_35 = arith.constant 1.000000e+00 : f32
    %172 = vector.broadcast %cst_35 : f32 to vector<2x128xf32>
    %173 = arith.addf %172, %171 : vector<2x128xf32>
    %174 = arith.divf %172, %173 : vector<2x128xf32>
    %175 = arith.select %5, %169, %174 : vector<2x128xi1>, vector<2x128xf32>
    %176 = vector.extract_strided_slice %175 {offsets = [0, 0], sizes = [2, 32], strides = [1, 1]} : vector<2x128xf32> to vector<2x32xf32>
    %177 = vector.extract_strided_slice %175 {offsets = [0, 32], sizes = [2, 32], strides = [1, 1]} : vector<2x128xf32> to vector<2x32xf32>
    %178 = vector.extract_strided_slice %175 {offsets = [0, 64], sizes = [2, 32], strides = [1, 1]} : vector<2x128xf32> to vector<2x32xf32>
    %179 = vector.extract_strided_slice %175 {offsets = [0, 96], sizes = [2, 32], strides = [1, 1]} : vector<2x128xf32> to vector<2x32xf32>
    %180 = arith.mulf %177, %162 : vector<2x32xf32>
    %181 = arith.mulf %176, %178 : vector<2x32xf32>
    %182 = arith.addf %180, %181 : vector<2x32xf32>
    %183 = math.tanh %182 : vector<2x32xf32>
    %184 = arith.mulf %179, %183 : vector<2x32xf32>
    %cst_36 = arith.constant dense<0.000000e+00> : vector<2x128xf32>
    %185 = tpu.matmul %184, %21, %cst_36 {dimension_numbers = #tpu.dot_dimension_numbers<[1], [0], [0], [1], [0, 0, 1, 1], [], []>} : vector<2x32xf32>, vector<32x128xf32>, vector<2x128xf32> -> vector<2x128xf32>
    %186 = arith.addf %185, %24 : vector<2x128xf32>
    %c0_37 = arith.constant 0 : index
    %c0_38 = arith.constant 0 : index
    %187 = vector.load %arg5[%c0_37, %c0_38] : memref<32x128xf32, #tpu.memory_space<vmem>>, vector<32x128xf32>
    %cst_39 = arith.constant 0.000000e+00 : f32
    %188 = vector.broadcast %cst_39 : f32 to vector<2x32xf32>
    %cst_40 = arith.constant 0.000000e+00 : f32
    %189 = vector.broadcast %cst_40 : f32 to vector<2x32xf32>
    %cst_41 = arith.constant dense<0.000000e+00> : vector<2x128xf32>
    %190 = tpu.matmul %188, %187, %cst_41 {dimension_numbers = #tpu.dot_dimension_numbers<[1], [0], [0], [1], [0, 0, 1, 1], [], []>} : vector<2x32xf32>, vector<32x128xf32>, vector<2x128xf32> -> vector<2x128xf32>
    %191 = arith.addf %46, %190 : vector<2x128xf32>
    %192 = math.tanh %191 : vector<2x128xf32>
    %193 = arith.negf %191 : vector<2x128xf32>
    %194 = math.exp %193 : vector<2x128xf32>
    %cst_42 = arith.constant 1.000000e+00 : f32
    %195 = vector.broadcast %cst_42 : f32 to vector<2x128xf32>
    %196 = arith.addf %195, %194 : vector<2x128xf32>
    %197 = arith.divf %195, %196 : vector<2x128xf32>
    %198 = arith.select %5, %192, %197 : vector<2x128xi1>, vector<2x128xf32>
    %199 = vector.extract_strided_slice %198 {offsets = [0, 0], sizes = [2, 32], strides = [1, 1]} : vector<2x128xf32> to vector<2x32xf32>
    %200 = vector.extract_strided_slice %198 {offsets = [0, 32], sizes = [2, 32], strides = [1, 1]} : vector<2x128xf32> to vector<2x32xf32>
    %201 = vector.extract_strided_slice %198 {offsets = [0, 64], sizes = [2, 32], strides = [1, 1]} : vector<2x128xf32> to vector<2x32xf32>
    %202 = vector.extract_strided_slice %198 {offsets = [0, 96], sizes = [2, 32], strides = [1, 1]} : vector<2x128xf32> to vector<2x32xf32>
    %203 = arith.mulf %200, %189 : vector<2x32xf32>
    %204 = arith.mulf %199, %201 : vector<2x32xf32>
    %205 = arith.addf %203, %204 : vector<2x32xf32>
    %206 = math.tanh %205 : vector<2x32xf32>
    %207 = arith.mulf %202, %206 : vector<2x32xf32>
    %cst_43 = arith.constant dense<0.000000e+00> : vector<2x128xf32>
    %208 = tpu.matmul %207, %187, %cst_43 {dimension_numbers = #tpu.dot_dimension_numbers<[1], [0], [0], [1], [0, 0, 1, 1], [], []>} : vector<2x32xf32>, vector<32x128xf32>, vector<2x128xf32> -> vector<2x128xf32>
    %209 = arith.addf %66, %208 : vector<2x128xf32>
    %210 = math.tanh %209 : vector<2x128xf32>
    %211 = arith.negf %209 : vector<2x128xf32>
    %212 = math.exp %211 : vector<2x128xf32>
    %cst_44 = arith.constant 1.000000e+00 : f32
    %213 = vector.broadcast %cst_44 : f32 to vector<2x128xf32>
    %214 = arith.addf %213, %212 : vector<2x128xf32>
    %215 = arith.divf %213, %214 : vector<2x128xf32>
    %216 = arith.select %5, %210, %215 : vector<2x128xi1>, vector<2x128xf32>
    %217 = vector.extract_strided_slice %216 {offsets = [0, 0], sizes = [2, 32], strides = [1, 1]} : vector<2x128xf32> to vector<2x32xf32>
    %218 = vector.extract_strided_slice %216 {offsets = [0, 32], sizes = [2, 32], strides = [1, 1]} : vector<2x128xf32> to vector<2x32xf32>
    %219 = vector.extract_strided_slice %216 {offsets = [0, 64], sizes = [2, 32], strides = [1, 1]} : vector<2x128xf32> to vector<2x32xf32>
    %220 = vector.extract_strided_slice %216 {offsets = [0, 96], sizes = [2, 32], strides = [1, 1]} : vector<2x128xf32> to vector<2x32xf32>
    %221 = arith.mulf %218, %205 : vector<2x32xf32>
    %222 = arith.mulf %217, %219 : vector<2x32xf32>
    %223 = arith.addf %221, %222 : vector<2x32xf32>
    %224 = math.tanh %223 : vector<2x32xf32>
    %225 = arith.mulf %220, %224 : vector<2x32xf32>
    %cst_45 = arith.constant dense<0.000000e+00> : vector<2x128xf32>
    %226 = tpu.matmul %225, %187, %cst_45 {dimension_numbers = #tpu.dot_dimension_numbers<[1], [0], [0], [1], [0, 0, 1, 1], [], []>} : vector<2x32xf32>, vector<32x128xf32>, vector<2x128xf32> -> vector<2x128xf32>
    %227 = arith.addf %86, %226 : vector<2x128xf32>
    %228 = math.tanh %227 : vector<2x128xf32>
    %229 = arith.negf %227 : vector<2x128xf32>
    %230 = math.exp %229 : vector<2x128xf32>
    %cst_46 = arith.constant 1.000000e+00 : f32
    %231 = vector.broadcast %cst_46 : f32 to vector<2x128xf32>
    %232 = arith.addf %231, %230 : vector<2x128xf32>
    %233 = arith.divf %231, %232 : vector<2x128xf32>
    %234 = arith.select %5, %228, %233 : vector<2x128xi1>, vector<2x128xf32>
    %235 = vector.extract_strided_slice %234 {offsets = [0, 0], sizes = [2, 32], strides = [1, 1]} : vector<2x128xf32> to vector<2x32xf32>
    %236 = vector.extract_strided_slice %234 {offsets = [0, 32], sizes = [2, 32], strides = [1, 1]} : vector<2x128xf32> to vector<2x32xf32>
    %237 = vector.extract_strided_slice %234 {offsets = [0, 64], sizes = [2, 32], strides = [1, 1]} : vector<2x128xf32> to vector<2x32xf32>
    %238 = vector.extract_strided_slice %234 {offsets = [0, 96], sizes = [2, 32], strides = [1, 1]} : vector<2x128xf32> to vector<2x32xf32>
    %239 = arith.mulf %236, %223 : vector<2x32xf32>
    %240 = arith.mulf %235, %237 : vector<2x32xf32>
    %241 = arith.addf %239, %240 : vector<2x32xf32>
    %242 = math.tanh %241 : vector<2x32xf32>
    %243 = arith.mulf %238, %242 : vector<2x32xf32>
    %cst_47 = arith.constant dense<0.000000e+00> : vector<2x128xf32>
    %244 = tpu.matmul %243, %187, %cst_47 {dimension_numbers = #tpu.dot_dimension_numbers<[1], [0], [0], [1], [0, 0, 1, 1], [], []>} : vector<2x32xf32>, vector<32x128xf32>, vector<2x128xf32> -> vector<2x128xf32>
    %245 = arith.addf %106, %244 : vector<2x128xf32>
    %246 = math.tanh %245 : vector<2x128xf32>
    %247 = arith.negf %245 : vector<2x128xf32>
    %248 = math.exp %247 : vector<2x128xf32>
    %cst_48 = arith.constant 1.000000e+00 : f32
    %249 = vector.broadcast %cst_48 : f32 to vector<2x128xf32>
    %250 = arith.addf %249, %248 : vector<2x128xf32>
    %251 = arith.divf %249, %250 : vector<2x128xf32>
    %252 = arith.select %5, %246, %251 : vector<2x128xi1>, vector<2x128xf32>
    %253 = vector.extract_strided_slice %252 {offsets = [0, 0], sizes = [2, 32], strides = [1, 1]} : vector<2x128xf32> to vector<2x32xf32>
    %254 = vector.extract_strided_slice %252 {offsets = [0, 32], sizes = [2, 32], strides = [1, 1]} : vector<2x128xf32> to vector<2x32xf32>
    %255 = vector.extract_strided_slice %252 {offsets = [0, 64], sizes = [2, 32], strides = [1, 1]} : vector<2x128xf32> to vector<2x32xf32>
    %256 = vector.extract_strided_slice %252 {offsets = [0, 96], sizes = [2, 32], strides = [1, 1]} : vector<2x128xf32> to vector<2x32xf32>
    %257 = arith.mulf %254, %241 : vector<2x32xf32>
    %258 = arith.mulf %253, %255 : vector<2x32xf32>
    %259 = arith.addf %257, %258 : vector<2x32xf32>
    %260 = math.tanh %259 : vector<2x32xf32>
    %261 = arith.mulf %256, %260 : vector<2x32xf32>
    %cst_49 = arith.constant dense<0.000000e+00> : vector<2x128xf32>
    %262 = tpu.matmul %261, %187, %cst_49 {dimension_numbers = #tpu.dot_dimension_numbers<[1], [0], [0], [1], [0, 0, 1, 1], [], []>} : vector<2x32xf32>, vector<32x128xf32>, vector<2x128xf32> -> vector<2x128xf32>
    %263 = arith.addf %126, %262 : vector<2x128xf32>
    %264 = math.tanh %263 : vector<2x128xf32>
    %265 = arith.negf %263 : vector<2x128xf32>
    %266 = math.exp %265 : vector<2x128xf32>
    %cst_50 = arith.constant 1.000000e+00 : f32
    %267 = vector.broadcast %cst_50 : f32 to vector<2x128xf32>
    %268 = arith.addf %267, %266 : vector<2x128xf32>
    %269 = arith.divf %267, %268 : vector<2x128xf32>
    %270 = arith.select %5, %264, %269 : vector<2x128xi1>, vector<2x128xf32>
    %271 = vector.extract_strided_slice %270 {offsets = [0, 0], sizes = [2, 32], strides = [1, 1]} : vector<2x128xf32> to vector<2x32xf32>
    %272 = vector.extract_strided_slice %270 {offsets = [0, 32], sizes = [2, 32], strides = [1, 1]} : vector<2x128xf32> to vector<2x32xf32>
    %273 = vector.extract_strided_slice %270 {offsets = [0, 64], sizes = [2, 32], strides = [1, 1]} : vector<2x128xf32> to vector<2x32xf32>
    %274 = vector.extract_strided_slice %270 {offsets = [0, 96], sizes = [2, 32], strides = [1, 1]} : vector<2x128xf32> to vector<2x32xf32>
    %275 = arith.mulf %272, %259 : vector<2x32xf32>
    %276 = arith.mulf %271, %273 : vector<2x32xf32>
    %277 = arith.addf %275, %276 : vector<2x32xf32>
    %278 = math.tanh %277 : vector<2x32xf32>
    %279 = arith.mulf %274, %278 : vector<2x32xf32>
    %cst_51 = arith.constant dense<0.000000e+00> : vector<2x128xf32>
    %280 = tpu.matmul %279, %187, %cst_51 {dimension_numbers = #tpu.dot_dimension_numbers<[1], [0], [0], [1], [0, 0, 1, 1], [], []>} : vector<2x32xf32>, vector<32x128xf32>, vector<2x128xf32> -> vector<2x128xf32>
    %281 = arith.addf %146, %280 : vector<2x128xf32>
    %282 = math.tanh %281 : vector<2x128xf32>
    %283 = arith.negf %281 : vector<2x128xf32>
    %284 = math.exp %283 : vector<2x128xf32>
    %cst_52 = arith.constant 1.000000e+00 : f32
    %285 = vector.broadcast %cst_52 : f32 to vector<2x128xf32>
    %286 = arith.addf %285, %284 : vector<2x128xf32>
    %287 = arith.divf %285, %286 : vector<2x128xf32>
    %288 = arith.select %5, %282, %287 : vector<2x128xi1>, vector<2x128xf32>
    %289 = vector.extract_strided_slice %288 {offsets = [0, 0], sizes = [2, 32], strides = [1, 1]} : vector<2x128xf32> to vector<2x32xf32>
    %290 = vector.extract_strided_slice %288 {offsets = [0, 32], sizes = [2, 32], strides = [1, 1]} : vector<2x128xf32> to vector<2x32xf32>
    %291 = vector.extract_strided_slice %288 {offsets = [0, 64], sizes = [2, 32], strides = [1, 1]} : vector<2x128xf32> to vector<2x32xf32>
    %292 = vector.extract_strided_slice %288 {offsets = [0, 96], sizes = [2, 32], strides = [1, 1]} : vector<2x128xf32> to vector<2x32xf32>
    %293 = arith.mulf %290, %277 : vector<2x32xf32>
    %294 = arith.mulf %289, %291 : vector<2x32xf32>
    %295 = arith.addf %293, %294 : vector<2x32xf32>
    %296 = math.tanh %295 : vector<2x32xf32>
    %297 = arith.mulf %292, %296 : vector<2x32xf32>
    %cst_53 = arith.constant dense<0.000000e+00> : vector<2x128xf32>
    %298 = tpu.matmul %297, %187, %cst_53 {dimension_numbers = #tpu.dot_dimension_numbers<[1], [0], [0], [1], [0, 0, 1, 1], [], []>} : vector<2x32xf32>, vector<32x128xf32>, vector<2x128xf32> -> vector<2x128xf32>
    %299 = arith.addf %166, %298 : vector<2x128xf32>
    %300 = math.tanh %299 : vector<2x128xf32>
    %301 = arith.negf %299 : vector<2x128xf32>
    %302 = math.exp %301 : vector<2x128xf32>
    %cst_54 = arith.constant 1.000000e+00 : f32
    %303 = vector.broadcast %cst_54 : f32 to vector<2x128xf32>
    %304 = arith.addf %303, %302 : vector<2x128xf32>
    %305 = arith.divf %303, %304 : vector<2x128xf32>
    %306 = arith.select %5, %300, %305 : vector<2x128xi1>, vector<2x128xf32>
    %307 = vector.extract_strided_slice %306 {offsets = [0, 0], sizes = [2, 32], strides = [1, 1]} : vector<2x128xf32> to vector<2x32xf32>
    %308 = vector.extract_strided_slice %306 {offsets = [0, 32], sizes = [2, 32], strides = [1, 1]} : vector<2x128xf32> to vector<2x32xf32>
    %309 = vector.extract_strided_slice %306 {offsets = [0, 64], sizes = [2, 32], strides = [1, 1]} : vector<2x128xf32> to vector<2x32xf32>
    %310 = vector.extract_strided_slice %306 {offsets = [0, 96], sizes = [2, 32], strides = [1, 1]} : vector<2x128xf32> to vector<2x32xf32>
    %311 = arith.mulf %308, %295 : vector<2x32xf32>
    %312 = arith.mulf %307, %309 : vector<2x32xf32>
    %313 = arith.addf %311, %312 : vector<2x32xf32>
    %314 = math.tanh %313 : vector<2x32xf32>
    %315 = arith.mulf %310, %314 : vector<2x32xf32>
    %cst_55 = arith.constant dense<0.000000e+00> : vector<2x128xf32>
    %316 = tpu.matmul %315, %187, %cst_55 {dimension_numbers = #tpu.dot_dimension_numbers<[1], [0], [0], [1], [0, 0, 1, 1], [], []>} : vector<2x32xf32>, vector<32x128xf32>, vector<2x128xf32> -> vector<2x128xf32>
    %317 = arith.addf %186, %316 : vector<2x128xf32>
    %318 = math.tanh %317 : vector<2x128xf32>
    %319 = arith.negf %317 : vector<2x128xf32>
    %320 = math.exp %319 : vector<2x128xf32>
    %cst_56 = arith.constant 1.000000e+00 : f32
    %321 = vector.broadcast %cst_56 : f32 to vector<2x128xf32>
    %322 = arith.addf %321, %320 : vector<2x128xf32>
    %323 = arith.divf %321, %322 : vector<2x128xf32>
    %324 = arith.select %5, %318, %323 : vector<2x128xi1>, vector<2x128xf32>
    %325 = vector.extract_strided_slice %324 {offsets = [0, 0], sizes = [2, 32], strides = [1, 1]} : vector<2x128xf32> to vector<2x32xf32>
    %326 = vector.extract_strided_slice %324 {offsets = [0, 32], sizes = [2, 32], strides = [1, 1]} : vector<2x128xf32> to vector<2x32xf32>
    %327 = vector.extract_strided_slice %324 {offsets = [0, 64], sizes = [2, 32], strides = [1, 1]} : vector<2x128xf32> to vector<2x32xf32>
    %328 = vector.extract_strided_slice %324 {offsets = [0, 96], sizes = [2, 32], strides = [1, 1]} : vector<2x128xf32> to vector<2x32xf32>
    %329 = arith.mulf %326, %313 : vector<2x32xf32>
    %330 = arith.mulf %325, %327 : vector<2x32xf32>
    %331 = arith.addf %329, %330 : vector<2x32xf32>
    %332 = math.tanh %331 : vector<2x32xf32>
    %333 = arith.mulf %328, %332 : vector<2x32xf32>
    %c0_57 = arith.constant 0 : index
    %c0_58 = arith.constant 0 : index
    %334 = vector.load %arg7[%c0_57, %c0_58] : memref<32x4xf32, #tpu.memory_space<vmem>>, vector<32x4xf32>
    %cst_59 = arith.constant dense<0.000000e+00> : vector<2x4xf32>
    %335 = tpu.matmul %333, %334, %cst_59 {dimension_numbers = #tpu.dot_dimension_numbers<[1], [0], [0], [1], [0, 0, 1, 1], [], []>} : vector<2x32xf32>, vector<32x4xf32>, vector<2x4xf32> -> vector<2x4xf32>
    %c0_60 = arith.constant 0 : index
    %c0_61 = arith.constant 0 : index
    %336 = vector.load %arg8[%c0_60, %c0_61] : memref<1x4xf32, #tpu.memory_space<vmem>>, vector<1x4xf32>
    %337 = vector.broadcast %336 : vector<1x4xf32> to vector<2x4xf32>
    %338 = arith.addf %335, %337 : vector<2x4xf32>
    %339 = arith.negf %338 : vector<2x4xf32>
    %340 = math.exp %339 : vector<2x4xf32>
    %cst_62 = arith.constant 1.000000e+00 : f32
    %341 = vector.broadcast %cst_62 : f32 to vector<2x4xf32>
    %342 = arith.addf %341, %340 : vector<2x4xf32>
    %343 = arith.divf %341, %342 : vector<2x4xf32>
    %c0_63 = arith.constant 0 : index
    %c0_64 = arith.constant 0 : index
    %344 = vector.load %arg9[%c0_63, %c0_64] : memref<2x4xf32, #tpu.memory_space<vmem>>, vector<2x4xf32>
    tpu.vector_store %arg9[%c0_63, %c0_64], %343 {strides = array<i32>} : memref<2x4xf32, #tpu.memory_space<vmem>>, vector<2x4xf32>,
    return
  }
}

</mosaic_0001>

<bundles_post_ra>
// kernel: tpu_custom_call.1
= control target key start
LH: loop header
LB: loop body
LE: loop exit
PB: predicated region body
PF: predicated region fallthrough
CT: control target
= control target key end

     0   :  { %14 = vsyncpa [#allocation3], 0  ;;  %s2107_s0 = inlined_call_operand.vmem [shape: f32[16,5], index: 0, kind: input, shape index: {}]   ;;  %s2108_s1 = inlined_call_operand.vmem [shape: f32[5,128], index: 1, kind: input, shape index: {}]   ;;  %s2109_s2 = inlined_call_operand.vmem [shape: f32[32,128], index: 2, kind: input, shape index: {}]   ;;  %s2110_s3 = inlined_call_operand.vmem [shape: f32[1,128], index: 3, kind: input, shape index: {}]   ;;  %s2111_s4 = inlined_call_operand.hbm [shape: f32[32,128], index: 4, kind: input, shape index: {}]   ;;  %s2112_s5 = inlined_call_operand.hbm [shape: f32[32,128], index: 5, kind: input, shape index: {}]   ;;  %s2113_s6 = inlined_call_operand.vmem [shape: f32[1,128], index: 6, kind: input, shape index: {}]   ;;  %s2114_s7 = inlined_call_operand.vmem [shape: f32[32,4], index: 7, kind: input, shape index: {}]   ;;  %s2115_s8 = inlined_call_operand.vmem [shape: f32[1,4], index: 8, kind: input, shape index: {}]   ;;  %s2116_s9 = inlined_call_operand.hbm [shape: f32[2,4], index: 9, kind: output, shape index: {}]  }
   0x1   :  { %15 = vsyncpa [#allocation6], 0 }
   0x2   :  { %16 = vsyncpa [#allocation4], 0  ;;  %s29_s11 = sshll.u32 %s2111_s4, 4  ;;  %s1691_s12 = smov [#allocation2]   ;;  %s30_s11 = int_to_ptr.hbm [resolvable:$true] %s29_s11 }
   0x3   :  { %s31_s13 = sshll.u32 %s1691_s12, 4  ;;  %s42_s16 = sshll.u32 %s2112_s5, 4  ;;  %s32_s13 = int_to_ptr.vmem [resolvable:$true] %s31_s13  ;;  %s43_s16 = int_to_ptr.hbm [resolvable:$true] %s42_s16 }
   0x4   :  { %s1692_s17 = smov 128   ;;  %s1693_s18 = smov 8  }
   0x5   :  { %37 = dma.hbm_to_vmem [thread:$0]  %s30_s11, 512, %s32_s13, [#allocation3], %s1692_s17, %s1692_s17, %s1693_s18  }
   0x6   :  { %s1694_s19 = smov [#allocation5]  }
   0x7   :  { %s44_s20 = sshll.u32 %s1694_s19, 4  ;;  %s45_s20 = int_to_ptr.vmem [resolvable:$true] %s44_s20 }
   0x8   :  { %50 = dma.hbm_to_vmem [thread:$0]  %s43_s16, 512, %s45_s20, [#allocation6], %s1692_s17, %s1692_s17, %s1693_s18  }
   0x9   :  { %1685 = dma.done.wait [#allocation3], 512  }
   0xa   :  { %1686 = vsyncadd [#allocation3], 4294966784 }
   0xb   :  { %1687 = dma.done.wait [#allocation6], 512  }
   0xc   :  { %1688 = vsyncadd [#allocation6], 4294966784  ;;  %vm84_vm0 = vcmask 1044480   ;;  %vm77_vm1 = vcmask 39936   ;;  %v1758_v0 = vld [vmem:[%s2109_s2 + $0x18] sm:$0xff]  ;;  %v1763_v1 = vld [vmem:[%s2109_s2 + $0x10] sm:$0xff]  ;;  %v65_v15 = vlaneseq }
   0xd   :  { %v72_v2 = vld [vmem:[%s2108_s1] sm:$0x1f]  ;;  %139 = vmatpush.msra.mxu1 %v1758_v0  ;;  %v1775_v4 = vld [vmem:[%s2109_s2 + $0x8] sm:$0xff]  ;;  %223 = vmatpush.msra.mxu3 %v1758_v0  ;;  %v1695_v6 = vmov 0.0   ;;  %s1697_s10 = smov 32   ;;  %v1820_v36 = vld [vmem:[#allocation2 + $0x18] sm:$0xff] }
   0xe   :  { %1427 = vmatpush.msk.msra.mxu0 %vm84_vm0, %v72_v2  ;;  %v70_v3 = vld [vmem:[%s2107_s0] sm:$0xff]  ;;  %v66_v17 = vand.u32 127, %v65_v15  ;;  %v1822_v37 = vld [vmem:[#allocation2 + $0x10] sm:$0xff]  ;;  %203 = vmatpush.msra.mxu2 %v1820_v36  ;;  %v1826_v38 = vld [vmem:[#allocation2 + $0x8] sm:$0xff]  ;;  %vm123_vm9 = vcmask 261120  }
   0xf   :  { %1428 = vmatmul.msk.f32.vlgmr.msra.gmra.mxu0 %vm77_vm1, %v70_v3  ;;  %140 = vmatpush.msra.mxu1 %v1763_v1  ;;  %v1784_v5 = vld [vmem:[%s2109_s2] sm:$0xff]  ;;  %v1357_v23 = vld [vmem:[%s2114_s7 + $0x10] sm:$0xff] }
  0x10   :  { %405 = vmatpush.msrb.mxu0 %v1758_v0  ;;  %224 = vmatpush.msra.mxu3 %v1763_v1  ;;  %v1802_v7 = vld [vmem:[%s2110_s3] ss:$0 sm:$0xff]  ;;  %vm67_vm2 = vcmp.ge.s32.totalorder %v66_v17, 64  ;;  %vm68_vm3 = vcmp.lt.s32.totalorder %v66_v17, 96  ;;  %s1696_s3 = smov 64  }
  0x11   :  { %141 = vmatpush.msra.mxu1 %v1775_v4  ;;  %vm1808_vm5 = vmand %vm67_vm2, %vm68_vm3  ;;  %204 = vmatpush.msra.mxu2 %v1822_v37  ;;  %v1831_v39 = vld [vmem:[#allocation2] sm:$0xff] }
  0x12   :  { %406 = vmatpush.msrb.mxu0 %v1763_v1  ;;  %225 = vmatpush.msra.mxu3 %v1775_v4 }
  0x13   :  { %142 = vmatpush.msra.mxu1 %v1784_v5  ;;  %205 = vmatpush.msra.mxu2 %v1826_v38 }
  0x14   :  { %407 = vmatpush.msrb.mxu0 %v1775_v4  ;;  %143 = vmatmul.f32.vlgmr.msra.gmra.mxu1 %v1695_v6 }
  0x15   :  { %226 = vmatpush.msra.mxu3 %v1784_v5  ;;  %294 = vmatpush.msrb.mxu1 %v1820_v36 }
  0x16   :  { %408 = vmatpush.msrb.mxu0 %v1784_v5  ;;  %206 = vmatpush.msra.mxu2 %v1831_v39 }
  0x17   :  { %385 = vmatpush.msrb.mxu3 %v1820_v36  ;;  %295 = vmatpush.msrb.mxu1 %v1822_v37 }
  0x18   :  { %583 = vmatpush.msra.mxu0 %v1758_v0  ;;  %314 = vmatpush.msrb.mxu2 %v1758_v0 }
  0x19   :  { %386 = vmatpush.msrb.mxu3 %v1822_v37  ;;  %296 = vmatpush.msrb.mxu1 %v1826_v38 }
  0x1a   :  { %584 = vmatpush.msra.mxu0 %v1763_v1  ;;  %315 = vmatpush.msrb.mxu2 %v1763_v1 }
  0x1b   :  { %387 = vmatpush.msrb.mxu3 %v1826_v38  ;;  %297 = vmatpush.msrb.mxu1 %v1831_v39 }
  0x1c   :  { %585 = vmatpush.msra.mxu0 %v1775_v4  ;;  %316 = vmatpush.msrb.mxu2 %v1775_v4 }
  0x1d   :  { %388 = vmatpush.msrb.mxu3 %v1831_v39  ;;  %476 = vmatpush.msra.mxu1 %v1820_v36 }
  0x1e   :  { %586 = vmatpush.msra.mxu0 %v1784_v5  ;;  %317 = vmatpush.msrb.mxu2 %v1784_v5 }
  0x1f   :  { %477 = vmatpush.msra.mxu1 %v1822_v37 }
  0x21   :  { %478 = vmatpush.msra.mxu1 %v1826_v38 }
  0x23   :  { %479 = vmatpush.msra.mxu1 %v1831_v39 }
  0x8c   :  { %v105_v8 = vpop.f32.mrf.mxu0 }
  0x8d   :  { %v1805_v9 = vadd.f32 %v1802_v7, %v105_v8 }
  0x91   :  { %v144_v10 = vpop.f32.mrf.mxu1 }
  0x92   :  { %v147_v11 = vadd.f32 %v144_v10, %v1805_v9 }
  0x94   :  { %v1430_v12 = vmul.f32 -1.442695, %v147_v11 }
  0x96   :  { %1481 = vpow2.f32 %v1430_v12 }
  0x9c   :  { %v1482_v13 = vpop.eup %1481 }
  0x9d   :  { %v152_v14 = vadd.f32 1.0, %v1482_v13 }
  0x9f   :  { %1483 = vrcp.f32 %v152_v14  ;;  %v164_v20 = vand.u32 2147483648, %v152_v14  ;;  %v162_v22 = vand.u32 2147483647, %v152_v14  ;;  %vm158_vm6 = vweird.f32 %v152_v14 }
  0xa0   :  { %1485 = vtanh.f32 %v147_v11 }
  0xa1   :  { %v165_v25 = vor.u32 1.1754944e-38, %v164_v20  ;;  %vm163_vm8 = vcmp.eq.f32.partialorder %v162_v22, 8.507059e+37 }
  0xa5   :  { %v1484_v16 = vpop.eup %1483 }
  0xa6   :  { %v154_v18 = vmul.f32 %v1484_v16, %v152_v14  ;;  %vm159_vm4 = vweird.f32 %v1484_v16  ;;  %v1486_v27 = vpop.eup %1485 }
  0xa7   :  { %vm160_vm7 = vmor %vm158_vm6, %vm159_vm4 }
  0xa8   :  { %v155_v19 = vsub.f32 1.0, %v154_v18 }
  0xaa   :  { %v156_v21 = vmul.f32 %v1484_v16, %v155_v19 }
  0xac   :  { %v157_v24 = vadd.f32 %v1484_v16, %v156_v21 }
  0xae   :  { %v161_v26 = vsel %vm160_vm7, %v1484_v16, %v157_v24 }
  0xaf   :  { %v166_v28 = vsel %vm163_vm8, %v165_v25, %v161_v26 }
  0xb0   :  { %v168_v29 = vsel %vm1808_vm5, %v1486_v27, %v166_v28 }
  0xb1   :  { %171 = vrot.lane.b32.xlu0 %v168_v29, %s1696_s3  ;;  %v169_v32 = vmul.f32 0.0, %v168_v29 }
 0x123   :  { %v172_v30 = vpop.permute.xlu0 %171 }
 0x124   :  { %v174_v31 = vmul.f32 %v172_v30, %v168_v29 }
 0x126   :  { %176 = vrot.lane.b32.xlu0 %v174_v31, %s1697_s10 }
 0x198   :  { %v177_v33 = vpop.permute.xlu0 %176 }
 0x199   :  { %v1816_v34 = vadd.f32 %v177_v33, %v169_v32 }
 0x19b   :  { %1487 = vtanh.f32 %v1816_v34  ;;  %v257_v63 = vrot.slane %v1816_v34, 6 }
 0x1a1   :  { %v1488_v35 = vpop.eup %1487 }
 0x1a2   :  { %182 = vrot.lane.b32.xlu1 %v1488_v35, %s1696_s3 }
 0x214   :  { %v183_v40 = vpop.permute.xlu1 %182 }
 0x215   :  { %v185_v41 = vmul.f32 %v183_v40, %v168_v29 }
 0x217   :  { %187 = vrot.lane.b32.xlu1 %v185_v41, %s1697_s10 }
 0x289   :  { %v188_v42 = vpop.permute.xlu1 %187 }
 0x28a   :  { %1431 = vmatmul.msk.f32.vlgmr.msra.gmra.mxu2 %vm123_vm9, %v188_v42  ;;  %1432 = vmatmul.msk.f32.vlgmr.msra.gmra.mxu3 %vm123_vm9, %v188_v42 }
 0x28b   :  { %496 = vmatpush.msra.mxu2 %v1758_v0  ;;  %563 = vmatpush.msra.mxu3 %v1820_v36 }
 0x28d   :  { %497 = vmatpush.msra.mxu2 %v1763_v1  ;;  %564 = vmatpush.msra.mxu3 %v1822_v37 }
 0x28f   :  { %498 = vmatpush.msra.mxu2 %v1775_v4  ;;  %565 = vmatpush.msra.mxu3 %v1826_v38 }
 0x291   :  { %499 = vmatpush.msra.mxu2 %v1784_v5  ;;  %566 = vmatpush.msra.mxu3 %v1831_v39 }
 0x30d   :  { %v228_v43 = vpop.f32.mrf.mxu3  ;;  %v1877_v15 = vpop.f32.mrf.mxu2 }
 0x30e   :  { %v232_v44 = vrot.slane %v228_v43, 6 }
 0x310   :  { %v234_v45 = vadd.f32 %v232_v44, %v1805_v9 }
 0x312   :  { %v1433_v46 = vmul.f32 -1.442695, %v234_v45 }
 0x314   :  { %1489 = vpow2.f32 %v1433_v46  ;;  %v71_v46 = vld [vmem:[%s2107_s0 + $0x8] sm:$0xff] }
 0x315   :  { %1429 = vmatmul.msk.f32.gmra.mxu0 %vm77_vm1, %v71_v46 }
 0x31a   :  { %v1490_v47 = vpop.eup %1489 }
 0x31b   :  { %v239_v48 = vadd.f32 1.0, %v1490_v47 }
 0x31d   :  { %1491 = vrcp.f32 %v239_v48  ;;  %v251_v52 = vand.u32 2147483648, %v239_v48  ;;  %v249_v54 = vand.u32 2147483647, %v239_v48  ;;  %vm245_vm11 = vweird.f32 %v239_v48 }
 0x31e   :  { %1493 = vtanh.f32 %v234_v45 }
 0x31f   :  { %v252_v56 = vor.u32 1.1754944e-38, %v251_v52  ;;  %vm250_vm13 = vcmp.eq.f32.partialorder %v249_v54, 8.507059e+37 }
 0x323   :  { %v1492_v49 = vpop.eup %1491 }
 0x324   :  { %v241_v50 = vmul.f32 %v1492_v49, %v239_v48  ;;  %vm246_vm10 = vweird.f32 %v1492_v49  ;;  %v1494_v58 = vpop.eup %1493 }
 0x325   :  { %vm247_vm12 = vmor %vm245_vm11, %vm246_vm10 }
 0x326   :  { %v242_v51 = vsub.f32 1.0, %v241_v50 }
 0x328   :  { %v243_v53 = vmul.f32 %v1492_v49, %v242_v51 }
 0x32a   :  { %v244_v55 = vadd.f32 %v1492_v49, %v243_v53 }
 0x32c   :  { %v248_v57 = vsel %vm247_vm12, %v1492_v49, %v244_v55 }
 0x32d   :  { %v253_v59 = vsel %vm250_vm13, %v252_v56, %v248_v57 }
 0x32e   :  { %v255_v60 = vsel %vm1808_vm5, %v1494_v58, %v253_v59 }
 0x32f   :  { %261 = vrot.lane.b32.xlu2 %v255_v60, %s1696_s3  ;;  %v259_v2 = vmul.f32 %v257_v63, %v255_v60 }
 0x389   :  { %v262_v61 = vpop.permute.xlu2 %261 }
 0x38a   :  { %v264_v62 = vmul.f32 %v262_v61, %v255_v60 }
 0x38c   :  { %266 = vrot.lane.b32.xlu2 %v264_v62, %s1697_s10 }
 0x392   :  { %v108_v51 = vpop.f32.mrf.mxu0 }
 0x3e6   :  { %v267_v3 = vpop.permute.xlu2 %266 }
 0x3e7   :  { %v269_v8 = vadd.f32 %v267_v3, %v259_v2 }
 0x3e9   :  { %1495 = vtanh.f32 %v269_v8  ;;  %v348_v41 = vrot.slane %v269_v8, 6 }
 0x3ef   :  { %v1496_v10 = vpop.eup %1495 }
 0x3f0   :  { %272 = vrot.lane.b32.xlu0 %v1496_v10, %s1696_s3 }
 0x462   :  { %v273_v11 = vpop.permute.xlu0 %272 }
 0x463   :  { %v275_v12 = vmul.f32 %v273_v11, %v255_v60 }
 0x465   :  { %v277_v13 = vrot.slane %v275_v12, 2 }
 0x467   :  { %278 = vrot.lane.b32.xlu1 %v277_v13, %s1697_s10 }
 0x4d9   :  { %v279_v14 = vpop.permute.xlu1 %278 }
 0x4da   :  { %1434 = vmatmul.msk.f32.vlgmr.msrb.gmra.mxu1 %vm123_vm9, %v279_v14  ;;  %1435 = vmatmul.msk.f32.vlgmr.msrb.gmra.mxu2 %vm123_vm9, %v279_v14 }
 0x4db   :  { %674 = vmatpush.msrb.mxu2 %v1758_v0  ;;  %654 = vmatpush.msrb.mxu1 %v1820_v36 }
 0x4dd   :  { %675 = vmatpush.msrb.mxu2 %v1763_v1  ;;  %655 = vmatpush.msrb.mxu1 %v1822_v37 }
 0x4df   :  { %676 = vmatpush.msrb.mxu2 %v1775_v4  ;;  %656 = vmatpush.msrb.mxu1 %v1826_v38 }
 0x4e1   :  { %677 = vmatpush.msrb.mxu2 %v1784_v5  ;;  %657 = vmatpush.msrb.mxu1 %v1831_v39 }
 0x55d   :  { %v319_v16 = vpop.f32.mrf.mxu2 }
 0x55e   :  { %v323_v17 = vrot.slane %v319_v16, 4 }
 0x560   :  { %v325_v18 = vadd.f32 %v323_v17, %v1805_v9 }
 0x562   :  { %v1436_v19 = vmul.f32 -1.442695, %v325_v18 }
 0x564   :  { %1497 = vpow2.f32 %v1436_v19 }
 0x56a   :  { %v1498_v20 = vpop.eup %1497 }
 0x56b   :  { %v330_v21 = vadd.f32 1.0, %v1498_v20  ;;  %v1914_v20 = vadd.f32 %v1802_v7, %v108_v51 }
 0x56d   :  { %1499 = vrcp.f32 %v330_v21  ;;  %v342_v26 = vand.u32 2147483648, %v330_v21  ;;  %v340_v28 = vand.u32 2147483647, %v330_v21  ;;  %vm336_vm15 = vweird.f32 %v330_v21 }
 0x56e   :  { %1501 = vtanh.f32 %v325_v18 }
 0x56f   :  { %v343_v30 = vor.u32 1.1754944e-38, %v342_v26  ;;  %vm341_vm2 = vcmp.eq.f32.partialorder %v340_v28, 8.507059e+37 }
 0x573   :  { %v1500_v22 = vpop.eup %1499 }
 0x574   :  { %v332_v24 = vmul.f32 %v1500_v22, %v330_v21  ;;  %vm337_vm14 = vweird.f32 %v1500_v22  ;;  %v1502_v32 = vpop.eup %1501 }
 0x575   :  { %vm338_vm0 = vmor %vm336_vm15, %vm337_vm14 }
 0x576   :  { %v333_v25 = vsub.f32 1.0, %v332_v24 }
 0x578   :  { %v334_v27 = vmul.f32 %v1500_v22, %v333_v25 }
 0x57a   :  { %v335_v29 = vadd.f32 %v1500_v22, %v334_v27 }
 0x57c   :  { %v339_v31 = vsel %vm338_vm0, %v1500_v22, %v335_v29 }
 0x57d   :  { %v344_v33 = vsel %vm341_vm2, %v343_v30, %v339_v31 }
 0x57e   :  { %v346_v34 = vsel %vm1808_vm5, %v1502_v32, %v344_v33 }
 0x57f   :  { %352 = vrot.lane.b32.xlu2 %v346_v34, %s1696_s3  ;;  %v350_v42 = vmul.f32 %v348_v41, %v346_v34 }
 0x5d9   :  { %v353_v35 = vpop.permute.xlu2 %352 }
 0x5da   :  { %v355_v40 = vmul.f32 %v353_v35, %v346_v34 }
 0x5dc   :  { %357 = vrot.lane.b32.xlu0 %v355_v40, %s1697_s10 }
 0x64e   :  { %v358_v43 = vpop.permute.xlu0 %357 }
 0x64f   :  { %v360_v44 = vadd.f32 %v358_v43, %v350_v42 }
 0x651   :  { %1503 = vtanh.f32 %v360_v44  ;;  %v439_v10 = vrot.slane %v360_v44, 6 }
 0x657   :  { %v1504_v45 = vpop.eup %1503 }
 0x658   :  { %363 = vrot.lane.b32.xlu1 %v1504_v45, %s1696_s3 }
 0x6ca   :  { %v364_v47 = vpop.permute.xlu1 %363 }
 0x6cb   :  { %v366_v48 = vmul.f32 %v364_v47, %v346_v34 }
 0x6cd   :  { %v368_v49 = vrot.slane %v366_v48, 4 }
 0x6cf   :  { %369 = vrot.lane.b32.xlu2 %v368_v49, %s1697_s10 }
 0x729   :  { %v370_v50 = vpop.permute.xlu2 %369 }
 0x72a   :  { %1437 = vmatmul.msk.f32.vlgmr.msrb.gmra.mxu3 %vm123_vm9, %v370_v50  ;;  %1438 = vmatmul.msk.f32.vlgmr.msrb.gmra.mxu0 %vm123_vm9, %v370_v50 }
 0x72b   :  { %745 = vmatpush.msrb.mxu3 %v1820_v36  ;;  %765 = vmatpush.msrb.mxu0 %v1758_v0 }
 0x72d   :  { %746 = vmatpush.msrb.mxu3 %v1822_v37  ;;  %766 = vmatpush.msrb.mxu0 %v1763_v1 }
 0x72f   :  { %747 = vmatpush.msrb.mxu3 %v1826_v38  ;;  %767 = vmatpush.msrb.mxu0 %v1775_v4 }
 0x731   :  { %748 = vmatpush.msrb.mxu3 %v1831_v39  ;;  %768 = vmatpush.msrb.mxu0 %v1784_v5 }
 0x7a7   :  { %v410_v52 = vpop.f32.mrf.mxu0 }
 0x7a8   :  { %v414_v53 = vrot.slane %v410_v52, 2 }
 0x7aa   :  { %v416_v54 = vadd.f32 %v414_v53, %v1805_v9 }
 0x7ac   :  { %v1439_v55 = vmul.f32 -1.442695, %v416_v54 }
 0x7ae   :  { %1505 = vpow2.f32 %v1439_v55 }
 0x7b4   :  { %v1506_v0 = vpop.eup %1505 }
 0x7b5   :  { %v421_v56 = vadd.f32 1.0, %v1506_v0 }
 0x7b7   :  { %1507 = vrcp.f32 %v421_v56  ;;  %v433_v59 = vand.u32 2147483648, %v421_v56  ;;  %v431_v60 = vand.u32 2147483647, %v421_v56  ;;  %vm427_vm3 = vweird.f32 %v421_v56 }
 0x7b8   :  { %1509 = vtanh.f32 %v416_v54 }
 0x7b9   :  { %v434_v5 = vor.u32 1.1754944e-38, %v433_v59  ;;  %vm432_vm6 = vcmp.eq.f32.partialorder %v431_v60, 8.507059e+37 }
 0x7bd   :  { %v1508_v57 = vpop.eup %1507 }
 0x7be   :  { %v423_v1 = vmul.f32 %v1508_v57, %v421_v56  ;;  %vm428_vm1 = vweird.f32 %v1508_v57  ;;  %v1510_v9 = vpop.eup %1509 }
 0x7bf   :  { %vm429_vm4 = vmor %vm427_vm3, %vm428_vm1 }
 0x7c0   :  { %v424_v58 = vsub.f32 1.0, %v423_v1 }
 0x7c2   :  { %v425_v4 = vmul.f32 %v1508_v57, %v424_v58 }
 0x7c4   :  { %v426_v61 = vadd.f32 %v1508_v57, %v425_v4 }
 0x7c6   :  { %v430_v62 = vsel %vm429_vm4, %v1508_v57, %v426_v61 }
 0x7c7   :  { %v435_v63 = vsel %vm432_vm6, %v434_v5, %v430_v62 }
 0x7c8   :  { %v437_v2 = vsel %vm1808_vm5, %v1510_v9, %v435_v63 }
 0x7c9   :  { %443 = vrot.lane.b32.xlu0 %v437_v2, %s1696_s3  ;;  %v441_v11 = vmul.f32 %v439_v10, %v437_v2 }
 0x83b   :  { %v444_v3 = vpop.permute.xlu0 %443 }
 0x83c   :  { %v446_v8 = vmul.f32 %v444_v3, %v437_v2 }
 0x83e   :  { %448 = vrot.lane.b32.xlu1 %v446_v8, %s1697_s10 }
 0x8b0   :  { %v449_v12 = vpop.permute.xlu1 %448 }
 0x8b1   :  { %v451_v13 = vadd.f32 %v449_v12, %v441_v11 }
 0x8b3   :  { %1511 = vtanh.f32 %v451_v13  ;;  %v527_v40 = vrot.slane %v451_v13, 6 }
 0x8b9   :  { %v1512_v14 = vpop.eup %1511 }
 0x8ba   :  { %454 = vrot.lane.b32.xlu2 %v1512_v14, %s1696_s3  ;;  %v1935_v14 = vld [vmem:[#allocation5 + $0x18] sm:$0xff] }
 0x914   :  { %v455_v16 = vpop.permute.xlu2 %454 }
 0x915   :  { %v457_v17 = vmul.f32 %v455_v16, %v437_v2  ;;  %v1937_v16 = vld [vmem:[#allocation5 + $0x10] sm:$0xff] }
 0x917   :  { %v459_v18 = vrot.slane %v457_v17, 6  ;;  %v1941_v17 = vld [vmem:[#allocation5 + $0x8] sm:$0xff] }
 0x919   :  { %460 = vrot.lane.b32.xlu0 %v459_v18, %s1697_s10  ;;  %v1946_v18 = vld [vmem:[#allocation5] sm:$0xff] }
 0x98b   :  { %v461_v19 = vpop.permute.xlu0 %460 }
 0x98c   :  { %1440 = vmatmul.msk.f32.vlgmr.msra.gmra.mxu1 %vm123_vm9, %v461_v19  ;;  %1441 = vmatmul.msk.f32.vlgmr.msra.gmra.mxu2 %vm123_vm9, %v461_v19 }
 0x98d   :  { %836 = vmatpush.msra.mxu1 %v1820_v36  ;;  %860 = vmatpush.msra.mxu2 %v1935_v14 }
 0x98f   :  { %837 = vmatpush.msra.mxu1 %v1822_v37  ;;  %861 = vmatpush.msra.mxu2 %v1937_v16 }
 0x991   :  { %838 = vmatpush.msra.mxu1 %v1826_v38  ;;  %862 = vmatpush.msra.mxu2 %v1941_v17 }
 0x993   :  { %839 = vmatpush.msra.mxu1 %v1831_v39  ;;  %863 = vmatpush.msra.mxu2 %v1946_v18 }
 0xa0f   :  { %v501_v21 = vpop.f32.mrf.mxu2 }
 0xa10   :  { %v504_v22 = vadd.f32 %v501_v21, %v1914_v20 }
 0xa12   :  { %v1442_v24 = vmul.f32 -1.442695, %v504_v22 }
 0xa14   :  { %1513 = vpow2.f32 %v1442_v24  ;;  %v1969_v24 = vld [vmem:[%s2113_s6] ss:$0 sm:$0xff] }
 0xa1a   :  { %v1514_v25 = vpop.eup %1513 }
 0xa1b   :  { %v509_v26 = vadd.f32 1.0, %v1514_v25 }
 0xa1d   :  { %1515 = vrcp.f32 %v509_v26  ;;  %v521_v37 = vand.u32 2147483648, %v509_v26  ;;  %v519_v38 = vand.u32 2147483647, %v509_v26  ;;  %vm515_vm8 = vweird.f32 %v509_v26 }
 0xa1e   :  { %1517 = vtanh.f32 %v504_v22 }
 0xa1f   :  { %v522_v7 = vor.u32 1.1754944e-38, %v521_v37  ;;  %vm520_vm11 = vcmp.eq.f32.partialorder %v519_v38, 8.507059e+37 }
 0xa23   :  { %v1516_v27 = vpop.eup %1515 }
 0xa24   :  { %v511_v28 = vmul.f32 %v1516_v27, %v509_v26  ;;  %vm516_vm7 = vweird.f32 %v1516_v27  ;;  %v1518_v31 = vpop.eup %1517 }
 0xa25   :  { %vm517_vm10 = vmor %vm515_vm8, %vm516_vm7 }
 0xa26   :  { %v512_v36 = vsub.f32 1.0, %v511_v28 }
 0xa28   :  { %v513_v29 = vmul.f32 %v1516_v27, %v512_v36 }
 0xa2a   :  { %v514_v39 = vadd.f32 %v1516_v27, %v513_v29 }
 0xa2c   :  { %v518_v30 = vsel %vm517_vm10, %v1516_v27, %v514_v39  ;;  %v209_v27 = vadd.f32 %v1969_v24, %v1877_v15 }
 0xa2d   :  { %v523_v32 = vsel %vm520_vm11, %v522_v7, %v518_v30 }
 0xa2e   :  { %v525_v33 = vsel %vm1808_vm5, %v1518_v31, %v523_v32 }
 0xa2f   :  { %531 = vrot.lane.b32.xlu1 %v525_v33, %s1696_s3  ;;  %v529_v41 = vmul.f32 %v527_v40, %v525_v33 }
 0xaa1   :  { %v532_v34 = vpop.permute.xlu1 %531 }
 0xaa2   :  { %v534_v35 = vmul.f32 %v532_v34, %v525_v33 }
 0xaa4   :  { %536 = vrot.lane.b32.xlu2 %v534_v35, %s1697_s10 }
 0xafe   :  { %v537_v42 = vpop.permute.xlu2 %536 }
 0xaff   :  { %v539_v43 = vadd.f32 %v537_v42, %v529_v41 }
 0xb01   :  { %1519 = vtanh.f32 %v539_v43  ;;  %v617_v63 = vrot.slane %v539_v43, 6 }
 0xb07   :  { %v1520_v44 = vpop.eup %1519 }
 0xb08   :  { %542 = vrot.lane.b32.xlu0 %v1520_v44, %s1696_s3 }
 0xb7a   :  { %v543_v45 = vpop.permute.xlu0 %542 }
 0xb7b   :  { %v545_v46 = vmul.f32 %v543_v45, %v525_v33 }
 0xb7d   :  { %547 = vrot.lane.b32.xlu1 %v545_v46, %s1697_s10 }
 0xbef   :  { %v548_v47 = vpop.permute.xlu1 %547 }
 0xbf0   :  { %1443 = vmatmul.msk.f32.vlgmr.msra.gmra.mxu3 %vm123_vm9, %v548_v47  ;;  %1444 = vmatmul.msk.f32.vlgmr.msra.gmra.mxu0 %vm123_vm9, %v548_v47 }
 0xbf1   :  { %924 = vmatpush.msra.mxu3 %v1935_v14  ;;  %988 = vmatpush.msra.mxu0 %v1935_v14 }
 0xbf3   :  { %925 = vmatpush.msra.mxu3 %v1937_v16  ;;  %989 = vmatpush.msra.mxu0 %v1937_v16 }
 0xbf5   :  { %926 = vmatpush.msra.mxu3 %v1941_v17  ;;  %990 = vmatpush.msra.mxu0 %v1941_v17 }
 0xbf7   :  { %927 = vmatpush.msra.mxu3 %v1946_v18  ;;  %991 = vmatpush.msra.mxu0 %v1946_v18 }
 0xc6d   :  { %v588_v48 = vpop.f32.mrf.mxu0 }
 0xc6e   :  { %v592_v49 = vrot.slane %v588_v48, 6 }
 0xc70   :  { %v594_v50 = vadd.f32 %v592_v49, %v1914_v20 }
 0xc72   :  { %v1445_v51 = vmul.f32 -1.442695, %v594_v50 }
 0xc74   :  { %1521 = vpow2.f32 %v1445_v51 }
 0xc7a   :  { %v1522_v52 = vpop.eup %1521 }
 0xc7b   :  { %v599_v53 = vadd.f32 1.0, %v1522_v52 }
 0xc7d   :  { %1523 = vrcp.f32 %v599_v53  ;;  %v611_v56 = vand.u32 2147483648, %v599_v53  ;;  %v609_v1 = vand.u32 2147483647, %v599_v53  ;;  %vm605_vm13 = vweird.f32 %v599_v53 }
 0xc7e   :  { %1525 = vtanh.f32 %v594_v50 }
 0xc7f   :  { %v612_v59 = vor.u32 1.1754944e-38, %v611_v56  ;;  %vm610_vm15 = vcmp.eq.f32.partialorder %v609_v1, 8.507059e+37 }
 0xc83   :  { %v1524_v54 = vpop.eup %1523 }
 0xc84   :  { %v601_v55 = vmul.f32 %v1524_v54, %v599_v53  ;;  %vm606_vm12 = vweird.f32 %v1524_v54  ;;  %v1526_v60 = vpop.eup %1525 }
 0xc85   :  { %vm607_vm14 = vmor %vm605_vm13, %vm606_vm12 }
 0xc86   :  { %v602_v0 = vsub.f32 1.0, %v601_v55 }
 0xc88   :  { %v603_v57 = vmul.f32 %v1524_v54, %v602_v0 }
 0xc8a   :  { %v604_v58 = vadd.f32 %v1524_v54, %v603_v57 }
 0xc8c   :  { %v608_v4 = vsel %vm607_vm14, %v1524_v54, %v604_v58 }
 0xc8d   :  { %v613_v61 = vsel %vm610_vm15, %v612_v59, %v608_v4 }
 0xc8e   :  { %v615_v5 = vsel %vm1808_vm5, %v1526_v60, %v613_v61 }
 0xc8f   :  { %621 = vrot.lane.b32.xlu2 %v615_v5, %s1696_s3  ;;  %v619_v2 = vmul.f32 %v617_v63, %v615_v5 }
 0xce9   :  { %v622_v62 = vpop.permute.xlu2 %621 }
 0xcea   :  { %v624_v9 = vmul.f32 %v622_v62, %v615_v5 }
 0xcec   :  { %626 = vrot.lane.b32.xlu0 %v624_v9, %s1697_s10 }
 0xd5e   :  { %v627_v3 = vpop.permute.xlu0 %626 }
 0xd5f   :  { %v1930_v8 = vadd.f32 %v627_v3, %v619_v2 }
 0xd61   :  { %1527 = vtanh.f32 %v1930_v8  ;;  %v708_v58 = vrot.slane %v1930_v8, 6 }
 0xd67   :  { %v1528_v10 = vpop.eup %1527 }
 0xd68   :  { %632 = vrot.lane.b32.xlu1 %v1528_v10, %s1696_s3 }
 0xdda   :  { %v633_v11 = vpop.permute.xlu1 %632 }
 0xddb   :  { %v635_v12 = vmul.f32 %v633_v11, %v615_v5 }
 0xddd   :  { %v637_v13 = vrot.slane %v635_v12, 2 }
 0xddf   :  { %638 = vrot.lane.b32.xlu2 %v637_v13, %s1697_s10 }
 0xe39   :  { %v639_v19 = vpop.permute.xlu2 %638 }
 0xe3a   :  { %1446 = vmatmul.msk.f32.vlgmr.msrb.gmra.mxu1 %vm123_vm9, %v639_v19  ;;  %1447 = vmatmul.msk.f32.vlgmr.msrb.gmra.mxu2 %vm123_vm9, %v639_v19  ;;  %v2004_v19 = vpop.f32.mrf.mxu3 }
 0xe3b   :  { %1052 = vmatpush.msrb.mxu1 %v1935_v14  ;;  %1116 = vmatpush.msrb.mxu2 %v1935_v14 }
 0xe3d   :  { %1053 = vmatpush.msrb.mxu1 %v1937_v16  ;;  %1117 = vmatpush.msrb.mxu2 %v1937_v16 }
 0xe3f   :  { %1054 = vmatpush.msrb.mxu1 %v1941_v17  ;;  %1118 = vmatpush.msrb.mxu2 %v1941_v17 }
 0xe41   :  { %1055 = vmatpush.msrb.mxu1 %v1946_v18  ;;  %1119 = vmatpush.msrb.mxu2 %v1946_v18 }
 0xe42   :  { %864 = vmatmul.f32.vlgmr.msra.gmra.mxu2 %v1695_v6 }
 0xebd   :  { %v679_v21 = vpop.f32.mrf.mxu2 }
 0xebe   :  { %v683_v22 = vrot.slane %v679_v21, 4  ;;  %v2006_v21 = vpop.f32.mrf.mxu3 }
 0xec0   :  { %v685_v25 = vadd.f32 %v683_v22, %v1914_v20 }
 0xec2   :  { %v1448_v26 = vmul.f32 -1.442695, %v685_v25 }
 0xec4   :  { %1529 = vpow2.f32 %v1448_v26 }
 0xec5   :  { %v865_v28 = vpop.f32.mrf.mxu2 }
 0xec6   :  { %v868_v36 = vadd.f32 %v865_v28, %v209_v27 }
 0xec8   :  { %v1453_v37 = vmul.f32 -1.442695, %v868_v36 }
 0xeca   :  { %v1530_v29 = vpop.eup %1529  ;;  %1531 = vpow2.f32 %v1453_v37 }
 0xecb   :  { %v690_v6 = vadd.f32 1.0, %v1530_v29 }
 0xecd   :  { %1533 = vrcp.f32 %v690_v6  ;;  %v702_v32 = vand.u32 2147483648, %v690_v6  ;;  %v700_v34 = vand.u32 2147483647, %v690_v6  ;;  %vm696_vm2 = vweird.f32 %v690_v6 }
 0xecf   :  { %v703_v41 = vor.u32 1.1754944e-38, %v702_v32  ;;  %vm701_vm3 = vcmp.eq.f32.partialorder %v700_v34, 8.507059e+37 }
 0xed0   :  { %v1532_v38 = vpop.eup %1531 }
 0xed1   :  { %v873_v39 = vadd.f32 1.0, %v1532_v38 }
 0xed3   :  { %v1534_v7 = vpop.eup %1533  ;;  %1535 = vrcp.f32 %v873_v39  ;;  %v885_v46 = vand.u32 2147483648, %v873_v39  ;;  %v883_v49 = vand.u32 2147483647, %v873_v39  ;;  %vm879_vm6 = vweird.f32 %v873_v39 }
 0xed4   :  { %v692_v30 = vmul.f32 %v1534_v7, %v690_v6  ;;  %1537 = vtanh.f32 %v685_v25  ;;  %vm697_vm0 = vweird.f32 %v1534_v7  ;;  %v299_v25 = vpop.f32.mrf.mxu1 }
 0xed5   :  { %vm698_vm1 = vmor %vm696_vm2, %vm697_vm0  ;;  %1539 = vtanh.f32 %v868_v36  ;;  %v886_v51 = vor.u32 1.1754944e-38, %v885_v46  ;;  %vm884_vm8 = vcmp.eq.f32.partialorder %v883_v49, 8.507059e+37  ;;  %v300_v26 = vadd.f32 %v1969_v24, %v299_v25 }
 0xed6   :  { %v693_v31 = vsub.f32 1.0, %v692_v30 }
 0xed8   :  { %v694_v33 = vmul.f32 %v1534_v7, %v693_v31 }
 0xed9   :  { %v1536_v15 = vpop.eup %1535 }
 0xeda   :  { %v695_v35 = vadd.f32 %v1534_v7, %v694_v33  ;;  %v875_v40 = vmul.f32 %v1536_v15, %v873_v39  ;;  %v1538_v44 = vpop.eup %1537  ;;  %vm880_vm4 = vweird.f32 %v1536_v15 }
 0xedb   :  { %vm881_vm7 = vmor %vm879_vm6, %vm880_vm4  ;;  %v1540_v53 = vpop.eup %1539 }
 0xedc   :  { %v699_v42 = vsel %vm698_vm1, %v1534_v7, %v695_v35  ;;  %v876_v43 = vsub.f32 1.0, %v875_v40 }
 0xedd   :  { %v704_v45 = vsel %vm701_vm3, %v703_v41, %v699_v42 }
 0xede   :  { %v706_v47 = vsel %vm1808_vm5, %v1538_v44, %v704_v45  ;;  %v877_v48 = vmul.f32 %v1536_v15, %v876_v43 }
 0xedf   :  { %712 = vrot.lane.b32.xlu0 %v706_v47, %s1696_s3  ;;  %v710_v59 = vmul.f32 %v708_v58, %v706_v47 }
 0xee0   :  { %v878_v50 = vadd.f32 %v1536_v15, %v877_v48 }
 0xee2   :  { %v882_v52 = vsel %vm881_vm7, %v1536_v15, %v878_v50 }
 0xee3   :  { %v887_v54 = vsel %vm884_vm8, %v886_v51, %v882_v52 }
 0xee4   :  { %v889_v55 = vsel %vm1808_vm5, %v1540_v53, %v887_v54 }
 0xee5   :  { %892 = vrot.lane.b32.xlu1 %v889_v55, %s1696_s3  ;;  %v890_v5 = vmul.f32 0.0, %v889_v55 }
 0xf51   :  { %v713_v0 = vpop.permute.xlu0 %712 }
 0xf52   :  { %v715_v56 = vmul.f32 %v713_v0, %v706_v47 }
 0xf54   :  { %717 = vrot.lane.b32.xlu2 %v715_v56, %s1697_s10 }
 0xf57   :  { %v893_v57 = vpop.permute.xlu1 %892 }
 0xf58   :  { %v895_v1 = vmul.f32 %v893_v57, %v889_v55 }
 0xf5a   :  { %897 = vrot.lane.b32.xlu0 %v895_v1, %s1697_s10 }
 0xfae   :  { %v718_v4 = vpop.permute.xlu2 %717 }
 0xfaf   :  { %v1983_v60 = vadd.f32 %v718_v4, %v710_v59 }
 0xfb1   :  { %1541 = vtanh.f32 %v1983_v60 }
 0xfb7   :  { %v1542_v61 = vpop.eup %1541 }
 0xfb8   :  { %723 = vrot.lane.b32.xlu1 %v1542_v61, %s1696_s3 }
 0xfcc   :  { %v898_v62 = vpop.permute.xlu0 %897 }
 0xfcd   :  { %v1987_v9 = vadd.f32 %v898_v62, %v890_v5 }
 0xfcf   :  { %1543 = vtanh.f32 %v1987_v9 }
 0xfd5   :  { %v1544_v63 = vpop.eup %1543 }
 0xfd6   :  { %903 = vrot.lane.b32.xlu2 %v1544_v63, %s1696_s3 }
0x102a   :  { %v724_v2 = vpop.permute.xlu1 %723 }
0x102b   :  { %v726_v3 = vmul.f32 %v724_v2, %v706_v47 }
0x102d   :  { %v728_v8 = vrot.slane %v726_v3, 4 }
0x102f   :  { %729 = vrot.lane.b32.xlu0 %v728_v8, %s1697_s10 }
0x1030   :  { %v904_v10 = vpop.permute.xlu2 %903 }
0x1031   :  { %v906_v11 = vmul.f32 %v904_v10, %v889_v55 }
0x1033   :  { %908 = vrot.lane.b32.xlu1 %v906_v11, %s1697_s10 }
0x10a1   :  { %v730_v12 = vpop.permute.xlu0 %729 }
0x10a2   :  { %1449 = vmatmul.msk.f32.vlgmr.msrb.gmra.mxu3 %vm123_vm9, %v730_v12  ;;  %1450 = vmatmul.msk.f32.vlgmr.msrb.gmra.mxu0 %vm123_vm9, %v730_v12 }
0x10a3   :  { %1180 = vmatpush.msrb.mxu3 %v1935_v14  ;;  %1244 = vmatpush.msrb.mxu0 %v1935_v14 }
0x10a5   :  { %1181 = vmatpush.msrb.mxu3 %v1937_v16  ;;  %1245 = vmatpush.msrb.mxu0 %v1937_v16  ;;  %v909_v13 = vpop.permute.xlu1 %908 }
0x10a7   :  { %1182 = vmatpush.msrb.mxu3 %v1941_v17  ;;  %1246 = vmatpush.msrb.mxu0 %v1941_v17 }
0x10a9   :  { %1183 = vmatpush.msrb.mxu3 %v1946_v18  ;;  %1247 = vmatpush.msrb.mxu0 %v1946_v18 }
0x10aa   :  { %1454 = vmatmul.msk.f32.vlgmr.msra.gmra.mxu3 %vm123_vm9, %v909_v13 }
0x111f   :  { %v770_v41 = vpop.f32.mrf.mxu0 }
0x1120   :  { %v774_v42 = vrot.slane %v770_v41, 2 }
0x1122   :  { %v776_v43 = vadd.f32 %v774_v42, %v1914_v20 }
0x1124   :  { %v1451_v44 = vmul.f32 -1.442695, %v776_v43 }
0x1125   :  { %v2008_v22 = vpop.f32.mrf.mxu3 }
0x112d   :  { %v929_v27 = vpop.f32.mrf.mxu3 }
0x112e   :  { %v932_v28 = vadd.f32 %v929_v27, %v300_v26 }
0x1130   :  { %v1455_v36 = vmul.f32 -1.442695, %v932_v28 }
0x1132   :  { %1545 = vpow2.f32 %v1455_v36  ;;  %v799_v36 = vrot.slane %v1983_v60, 6 }
0x1138   :  { %v1546_v37 = vpop.eup %1545 }
0x1139   :  { %v937_v29 = vadd.f32 1.0, %v1546_v37 }
0x113b   :  { %1547 = vrcp.f32 %v937_v29  ;;  %v949_v7 = vand.u32 2147483648, %v937_v29  ;;  %v947_v31 = vand.u32 2147483647, %v937_v29  ;;  %vm943_vm11 = vweird.f32 %v937_v29 }
0x113c   :  { %1549 = vtanh.f32 %v932_v28 }
0x113d   :  { %v950_v33 = vor.u32 1.1754944e-38, %v949_v7  ;;  %vm948_vm13 = vcmp.eq.f32.partialorder %v947_v31, 8.507059e+37  ;;  %1551 = vpow2.f32 %v1451_v44 }
0x1141   :  { %v1548_v6 = vpop.eup %1547 }
0x1142   :  { %v939_v38 = vmul.f32 %v1548_v6, %v937_v29  ;;  %vm944_vm10 = vweird.f32 %v1548_v6  ;;  %v1550_v15 = vpop.eup %1549 }
0x1143   :  { %vm945_vm12 = vmor %vm943_vm11, %vm944_vm10  ;;  %v1552_v45 = vpop.eup %1551 }
0x1144   :  { %v940_v39 = vsub.f32 1.0, %v939_v38  ;;  %v781_v46 = vadd.f32 1.0, %v1552_v45 }
0x1146   :  { %v941_v30 = vmul.f32 %v1548_v6, %v940_v39  ;;  %1553 = vrcp.f32 %v781_v46  ;;  %v793_v54 = vand.u32 2147483648, %v781_v46  ;;  %vm787_vm15 = vweird.f32 %v781_v46 }
0x1147   :  { %v791_v55 = vand.u32 2147483647, %v781_v46  ;;  %1555 = vtanh.f32 %v776_v43 }
0x1148   :  { %v942_v32 = vadd.f32 %v1548_v6, %v941_v30  ;;  %v794_v0 = vor.u32 1.1754944e-38, %v793_v54 }
0x1149   :  { %vm792_vm2 = vcmp.eq.f32.partialorder %v791_v55, 8.507059e+37 }
0x114a   :  { %v946_v34 = vsel %vm945_vm12, %v1548_v6, %v942_v32 }
0x114b   :  { %v951_v35 = vsel %vm948_vm13, %v950_v33, %v946_v34 }
0x114c   :  { %v953_v40 = vsel %vm1808_vm5, %v1550_v15, %v951_v35  ;;  %v1554_v47 = vpop.eup %1553 }
0x114d   :  { %956 = vrot.lane.b32.xlu2 %v953_v40, %s1696_s3  ;;  %v783_v48 = vmul.f32 %v1554_v47, %v781_v46  ;;  %vm788_vm14 = vweird.f32 %v1554_v47  ;;  %v1556_v57 = vpop.eup %1555  ;;  %v954_v58 = vmul.f32 %v953_v40, %v1987_v9  ;;  %v391_v9 = vadd.f32 %v1969_v24, %v2004_v19 }
0x114e   :  { %vm789_vm0 = vmor %vm787_vm15, %vm788_vm14 }
0x114f   :  { %v784_v49 = vsub.f32 1.0, %v783_v48 }
0x1151   :  { %v785_v50 = vmul.f32 %v1554_v47, %v784_v49 }
0x1153   :  { %v786_v52 = vadd.f32 %v1554_v47, %v785_v50  ;;  %v481_v50 = vpop.f32.mrf.mxu1 }
0x1155   :  { %v790_v20 = vsel %vm789_vm0, %v1554_v47, %v786_v52 }
0x1156   :  { %v795_v56 = vsel %vm792_vm2, %v794_v0, %v790_v20 }
0x1157   :  { %v797_v1 = vsel %vm1808_vm5, %v1556_v57, %v795_v56 }
0x1158   :  { %v801_v38 = vmul.f32 %v799_v36, %v797_v1 }
0x11a7   :  { %v957_v51 = vpop.permute.xlu2 %956 }
0x11a8   :  { %v959_v53 = vmul.f32 %v957_v51, %v953_v40  ;;  %v2041_v51 = vpop.f32.mrf.mxu1 }
0x11aa   :  { %961 = vrot.lane.b32.xlu0 %v959_v53, %s1697_s10 }
0x11b2   :  { %803 = vrot.lane.b32.xlu0 %v797_v1, %s1696_s3 }
0x121c   :  { %v962_v59 = vpop.permute.xlu0 %961 }
0x121d   :  { %v964_v4 = vadd.f32 %v962_v59, %v954_v58 }
0x121f   :  { %1557 = vtanh.f32 %v964_v4 }
0x1224   :  { %v804_v63 = vpop.permute.xlu0 %803 }
0x1225   :  { %v1558_v61 = vpop.eup %1557  ;;  %v806_v2 = vmul.f32 %v804_v63, %v797_v1 }
0x1226   :  { %967 = vrot.lane.b32.xlu1 %v1558_v61, %s1696_s3 }
0x1298   :  { %v968_v5 = vpop.permute.xlu1 %967 }
0x1299   :  { %v970_v62 = vmul.f32 %v968_v5, %v953_v40 }
0x129b   :  { %972 = vrot.lane.b32.xlu2 %v970_v62, %s1697_s10 }
0x12a3   :  { %808 = vrot.lane.b32.xlu2 %v806_v2, %s1697_s10 }
0x12f5   :  { %v973_v3 = vpop.permute.xlu2 %972 }
0x12f6   :  { %1456 = vmatmul.msk.f32.vlgmr.msra.gmra.mxu0 %vm123_vm9, %v973_v3 }
0x12fd   :  { %v809_v6 = vpop.permute.xlu2 %808 }
0x12fe   :  { %v811_v7 = vadd.f32 %v809_v6, %v801_v38 }
0x1373   :  { %v993_v8 = vpop.f32.mrf.mxu0 }
0x1374   :  { %v996_v10 = vadd.f32 %v993_v8, %v391_v9 }
0x1376   :  { %v1457_v11 = vmul.f32 -1.442695, %v996_v10 }
0x1378   :  { %1559 = vpow2.f32 %v1457_v11 }
0x137e   :  { %v1560_v12 = vpop.eup %1559 }
0x137f   :  { %v1001_v13 = vadd.f32 1.0, %v1560_v12 }
0x1381   :  { %1561 = vrcp.f32 %v1001_v13  ;;  %v1013_v28 = vand.u32 2147483648, %v1001_v13  ;;  %v1011_v29 = vand.u32 2147483647, %v1001_v13  ;;  %vm1007_vm3 = vweird.f32 %v1001_v13 }
0x1382   :  { %1563 = vtanh.f32 %v996_v10 }
0x1383   :  { %v1014_v39 = vor.u32 1.1754944e-38, %v1013_v28  ;;  %vm1012_vm6 = vcmp.eq.f32.partialorder %v1011_v29, 8.507059e+37  ;;  %1565 = vtanh.f32 %v811_v7 }
0x1387   :  { %v1562_v25 = vpop.eup %1561 }
0x1388   :  { %v1003_v26 = vmul.f32 %v1562_v25, %v1001_v13  ;;  %vm1008_vm1 = vweird.f32 %v1562_v25  ;;  %v1564_v31 = vpop.eup %1563 }
0x1389   :  { %vm1009_vm4 = vmor %vm1007_vm3, %vm1008_vm1  ;;  %v1566_v60 = vpop.eup %1565 }
0x138a   :  { %v1004_v27 = vsub.f32 1.0, %v1003_v26 }
0x138c   :  { %v1005_v37 = vmul.f32 %v1562_v25, %v1004_v27 }
0x138e   :  { %v1006_v19 = vadd.f32 %v1562_v25, %v1005_v37 }
0x1390   :  { %v1010_v30 = vsel %vm1009_vm4, %v1562_v25, %v1006_v19  ;;  %v569_v25 = vadd.f32 %v1969_v24, %v2006_v21 }
0x1391   :  { %v1015_v32 = vsel %vm1012_vm6, %v1014_v39, %v1010_v30 }
0x1392   :  { %v1017_v33 = vsel %vm1808_vm5, %v1564_v31, %v1015_v32 }
0x1393   :  { %1020 = vrot.lane.b32.xlu1 %v1017_v33, %s1696_s3  ;;  %v1018_v42 = vmul.f32 %v1017_v33, %v964_v4 }
0x139b   :  { %814 = vrot.lane.b32.xlu1 %v1566_v60, %s1696_s3 }
0x1405   :  { %v1021_v34 = vpop.permute.xlu1 %1020 }
0x1406   :  { %v1023_v15 = vmul.f32 %v1021_v34, %v1017_v33 }
0x1408   :  { %1025 = vrot.lane.b32.xlu0 %v1023_v15, %s1697_s10 }
0x140d   :  { %v815_v35 = vpop.permute.xlu1 %814 }
0x140e   :  { %v817_v40 = vmul.f32 %v815_v35, %v797_v1 }
0x1410   :  { %v819_v41 = vrot.slane %v817_v40, 6 }
0x1412   :  { %820 = vrot.lane.b32.xlu0 %v819_v41, %s1697_s10 }
0x147a   :  { %v1026_v43 = vpop.permute.xlu0 %1025 }
0x147b   :  { %v1028_v44 = vadd.f32 %v1026_v43, %v1018_v42 }
0x147d   :  { %1567 = vtanh.f32 %v1028_v44 }
0x1483   :  { %v1568_v45 = vpop.eup %1567 }
0x1484   :  { %1031 = vrot.lane.b32.xlu2 %v1568_v45, %s1696_s3  ;;  %v821_v46 = vpop.permute.xlu0 %820 }
0x1485   :  { %1452 = vmatmul.msk.f32.vlgmr.msra.gmra.mxu1 %vm123_vm9, %v821_v46  ;;  %v660_v46 = vadd.f32 %v1969_v24, %v2041_v51 }
0x1486   :  { %1308 = vmatpush.msra.mxu1 %v1935_v14  ;;  %v482_v14 = vadd.f32 %v1969_v24, %v481_v50 }
0x1488   :  { %1309 = vmatpush.msra.mxu1 %v1937_v16 }
0x148a   :  { %1310 = vmatpush.msra.mxu1 %v1941_v17 }
0x148c   :  { %1311 = vmatpush.msra.mxu1 %v1946_v18 }
0x14de   :  { %v1032_v47 = vpop.permute.xlu2 %1031 }
0x14df   :  { %v1034_v48 = vmul.f32 %v1032_v47, %v1017_v33 }
0x14e1   :  { %1036 = vrot.lane.b32.xlu1 %v1034_v48, %s1697_s10 }
0x1502   :  { %v2043_v52 = vpop.f32.mrf.mxu1 }
0x1553   :  { %v1037_v49 = vpop.permute.xlu1 %1036 }
0x1554   :  { %1458 = vmatmul.msk.f32.vlgmr.msrb.gmra.mxu1 %vm123_vm9, %v1037_v49 }
0x15d1   :  { %v1057_v53 = vpop.f32.mrf.mxu1 }
0x15d2   :  { %v1060_v16 = vadd.f32 %v1057_v53, %v482_v14 }
0x15d4   :  { %v1459_v54 = vmul.f32 -1.442695, %v1060_v16 }
0x15d6   :  { %1569 = vpow2.f32 %v1459_v54 }
0x15dc   :  { %v1570_v17 = vpop.eup %1569 }
0x15dd   :  { %v1065_v18 = vadd.f32 1.0, %v1570_v17 }
0x15df   :  { %1571 = vrcp.f32 %v1065_v18  ;;  %v1077_v56 = vand.u32 2147483648, %v1065_v18  ;;  %v1075_v1 = vand.u32 2147483647, %v1065_v18  ;;  %vm1071_vm8 = vweird.f32 %v1065_v18 }
0x15e0   :  { %1573 = vtanh.f32 %v1060_v16 }
0x15e1   :  { %v1078_v59 = vor.u32 1.1754944e-38, %v1077_v56  ;;  %vm1076_vm11 = vcmp.eq.f32.partialorder %v1075_v1, 8.507059e+37 }
0x15e5   :  { %v1572_v55 = vpop.eup %1571 }
0x15e6   :  { %v1067_v20 = vmul.f32 %v1572_v55, %v1065_v18  ;;  %vm1072_vm7 = vweird.f32 %v1572_v55  ;;  %v1574_v61 = vpop.eup %1573 }
0x15e7   :  { %vm1073_vm10 = vmor %vm1071_vm8, %vm1072_vm7 }
0x15e8   :  { %v1068_v0 = vsub.f32 1.0, %v1067_v20 }
0x15ea   :  { %v1069_v57 = vmul.f32 %v1572_v55, %v1068_v0 }
0x15ec   :  { %v1070_v58 = vadd.f32 %v1572_v55, %v1069_v57 }
0x15ee   :  { %v1074_v4 = vsel %vm1073_vm10, %v1572_v55, %v1070_v58 }
0x15ef   :  { %v1079_v5 = vsel %vm1076_vm11, %v1078_v59, %v1074_v4 }
0x15f0   :  { %v1081_v62 = vsel %vm1808_vm5, %v1574_v61, %v1079_v5 }
0x15f1   :  { %1084 = vrot.lane.b32.xlu2 %v1081_v62, %s1696_s3  ;;  %v1082_v3 = vmul.f32 %v1081_v62, %v1028_v44 }
0x164b   :  { %v1085_v63 = vpop.permute.xlu2 %1084 }
0x164c   :  { %v1087_v2 = vmul.f32 %v1085_v63, %v1081_v62 }
0x164e   :  { %1089 = vrot.lane.b32.xlu0 %v1087_v2, %s1697_s10 }
0x16c0   :  { %v1090_v9 = vpop.permute.xlu0 %1089 }
0x16c1   :  { %v1092_v8 = vadd.f32 %v1090_v9, %v1082_v3  ;;  %v751_v9 = vadd.f32 %v1969_v24, %v2008_v22 }
0x16c3   :  { %1575 = vtanh.f32 %v1092_v8 }
0x16c9   :  { %v1576_v10 = vpop.eup %1575 }
0x16ca   :  { %1095 = vrot.lane.b32.xlu1 %v1576_v10, %s1696_s3 }
0x173c   :  { %v1096_v11 = vpop.permute.xlu1 %1095 }
0x173d   :  { %v1098_v12 = vmul.f32 %v1096_v11, %v1081_v62 }
0x173f   :  { %1100 = vrot.lane.b32.xlu2 %v1098_v12, %s1697_s10 }
0x1799   :  { %v1101_v13 = vpop.permute.xlu2 %1100 }
0x179a   :  { %1460 = vmatmul.msk.f32.vlgmr.msrb.gmra.mxu2 %vm123_vm9, %v1101_v13 }
0x181d   :  { %v1121_v26 = vpop.f32.mrf.mxu2 }
0x181e   :  { %v1124_v27 = vadd.f32 %v1121_v26, %v569_v25 }
0x1820   :  { %v1461_v28 = vmul.f32 -1.442695, %v1124_v27 }
0x1822   :  { %1577 = vpow2.f32 %v1461_v28 }
0x1828   :  { %v1578_v36 = vpop.eup %1577 }
0x1829   :  { %v1129_v37 = vadd.f32 1.0, %v1578_v36 }
0x182b   :  { %1579 = vrcp.f32 %v1129_v37  ;;  %v1141_v19 = vand.u32 2147483648, %v1129_v37  ;;  %v1139_v7 = vand.u32 2147483647, %v1129_v37  ;;  %vm1135_vm13 = vweird.f32 %v1129_v37 }
0x182c   :  { %1581 = vtanh.f32 %v1124_v27 }
0x182d   :  { %v1142_v31 = vor.u32 1.1754944e-38, %v1141_v19  ;;  %vm1140_vm15 = vcmp.eq.f32.partialorder %v1139_v7, 8.507059e+37 }
0x1831   :  { %v1580_v29 = vpop.eup %1579 }
0x1832   :  { %v1131_v6 = vmul.f32 %v1580_v29, %v1129_v37  ;;  %vm1136_vm12 = vweird.f32 %v1580_v29  ;;  %v1582_v32 = vpop.eup %1581 }
0x1833   :  { %vm1137_vm14 = vmor %vm1135_vm13, %vm1136_vm12 }
0x1834   :  { %v1132_v38 = vsub.f32 1.0, %v1131_v6 }
0x1836   :  { %v1133_v39 = vmul.f32 %v1580_v29, %v1132_v38 }
0x1838   :  { %v1134_v30 = vadd.f32 %v1580_v29, %v1133_v39 }
0x183a   :  { %v1138_v21 = vsel %vm1137_vm14, %v1580_v29, %v1134_v30 }
0x183b   :  { %v1143_v33 = vsel %vm1140_vm15, %v1142_v31, %v1138_v21  ;;  %vm1407_vm15 = vcmask 25600  }
0x183c   :  { %v1145_v60 = vsel %vm1808_vm5, %v1582_v32, %v1143_v33 }
0x183d   :  { %1148 = vrot.lane.b32.xlu0 %v1145_v60, %s1696_s3  ;;  %v1146_v35 = vmul.f32 %v1145_v60, %v1092_v8 }
0x18af   :  { %v1149_v34 = vpop.permute.xlu0 %1148 }
0x18b0   :  { %v1151_v15 = vmul.f32 %v1149_v34, %v1145_v60 }
0x18b2   :  { %1153 = vrot.lane.b32.xlu1 %v1151_v15, %s1697_s10 }
0x1924   :  { %v1154_v40 = vpop.permute.xlu1 %1153 }
0x1925   :  { %v1156_v41 = vadd.f32 %v1154_v40, %v1146_v35  ;;  %v842_v35 = vadd.f32 %v1969_v24, %v2043_v52 }
0x1927   :  { %1583 = vtanh.f32 %v1156_v41 }
0x192d   :  { %v1584_v42 = vpop.eup %1583 }
0x192e   :  { %1159 = vrot.lane.b32.xlu2 %v1584_v42, %s1696_s3 }
0x1988   :  { %v1160_v43 = vpop.permute.xlu2 %1159 }
0x1989   :  { %v1162_v44 = vmul.f32 %v1160_v43, %v1145_v60 }
0x198b   :  { %1164 = vrot.lane.b32.xlu0 %v1162_v44, %s1697_s10 }
0x19fd   :  { %v1165_v45 = vpop.permute.xlu0 %1164 }
0x19fe   :  { %1462 = vmatmul.msk.f32.vlgmr.msrb.gmra.mxu3 %vm123_vm9, %v1165_v45 }
0x1a81   :  { %v1185_v47 = vpop.f32.mrf.mxu3 }
0x1a82   :  { %v1188_v48 = vadd.f32 %v1185_v47, %v660_v46 }
0x1a84   :  { %v1463_v49 = vmul.f32 -1.442695, %v1188_v48 }
0x1a86   :  { %1585 = vpow2.f32 %v1463_v49 }
0x1a8c   :  { %v1586_v50 = vpop.eup %1585 }
0x1a8d   :  { %v1193_v14 = vadd.f32 1.0, %v1586_v50 }
0x1a8f   :  { %1587 = vrcp.f32 %v1193_v14  ;;  %v1205_v17 = vand.u32 2147483648, %v1193_v14  ;;  %v1203_v55 = vand.u32 2147483647, %v1193_v14  ;;  %vm1199_vm2 = vweird.f32 %v1193_v14 }
0x1a90   :  { %1589 = vtanh.f32 %v1188_v48 }
0x1a91   :  { %v1206_v0 = vor.u32 1.1754944e-38, %v1205_v17  ;;  %vm1204_vm3 = vcmp.eq.f32.partialorder %v1203_v55, 8.507059e+37 }
0x1a95   :  { %v1588_v53 = vpop.eup %1587 }
0x1a96   :  { %v1195_v16 = vmul.f32 %v1588_v53, %v1193_v14  ;;  %vm1200_vm0 = vweird.f32 %v1588_v53  ;;  %v1590_v56 = vpop.eup %1589 }
0x1a97   :  { %vm1201_vm1 = vmor %vm1199_vm2, %vm1200_vm0 }
0x1a98   :  { %v1196_v54 = vsub.f32 1.0, %v1195_v16 }
0x1a9a   :  { %v1197_v18 = vmul.f32 %v1588_v53, %v1196_v54 }
0x1a9c   :  { %v1198_v20 = vadd.f32 %v1588_v53, %v1197_v18 }
0x1a9e   :  { %v1202_v51 = vsel %vm1201_vm1, %v1588_v53, %v1198_v20 }
0x1a9f   :  { %v1207_v57 = vsel %vm1204_vm3, %v1206_v0, %v1202_v51 }
0x1aa0   :  { %v1209_v1 = vsel %vm1808_vm5, %v1590_v56, %v1207_v57  ;;  %v1358_v56 = vld [vmem:[%s2114_s7 + $0x18] sm:$0xff]  ;;  %v1356_v57 = vld [vmem:[%s2114_s7 + $0x8] sm:$0xff] }
0x1aa1   :  { %1212 = vrot.lane.b32.xlu1 %v1209_v1, %s1696_s3  ;;  %v1210_v4 = vmul.f32 %v1209_v1, %v1156_v41  ;;  %1380 = vmatpush.msra.mxu2 %v1358_v56 }
0x1aa3   :  { %1381 = vmatpush.msra.mxu2 %v1357_v23 }
0x1aa5   :  { %1382 = vmatpush.msra.mxu2 %v1356_v57 }
0x1b13   :  { %v1213_v58 = vpop.permute.xlu1 %1212 }
0x1b14   :  { %v1215_v59 = vmul.f32 %v1213_v58, %v1209_v1 }
0x1b16   :  { %1217 = vrot.lane.b32.xlu2 %v1215_v59, %s1697_s10 }
0x1b70   :  { %v1218_v61 = vpop.permute.xlu2 %1217 }
0x1b71   :  { %v1220_v5 = vadd.f32 %v1218_v61, %v1210_v4  ;;  %v1480_v61 = vld [vmem:[%s2115_s8] ss:$0 sm:$0xff]  ;;  %s1416_s8 = sshll.u32 %s2116_s9, 4  ;;  %s1417_s8 = int_to_ptr.hbm [resolvable:$true] %s1416_s8 }
0x1b73   :  { %1591 = vtanh.f32 %v1220_v5 }
0x1b79   :  { %v1592_v62 = vpop.eup %1591 }
0x1b7a   :  { %1223 = vrot.lane.b32.xlu0 %v1592_v62, %s1696_s3 }
0x1bec   :  { %v1224_v63 = vpop.permute.xlu0 %1223 }
0x1bed   :  { %v1226_v2 = vmul.f32 %v1224_v63, %v1209_v1  ;;  %v1355_v1 = vld [vmem:[%s2114_s7] sm:$0xff]  ;;  %s1698_s7 = smov [#allocation7]  }
0x1bee   :  { %1383 = vmatpush.msra.mxu2 %v1355_v1  ;;  %s1414_s5 = sshll.u32 %s1698_s7, 4  ;;  %s1415_s5 = int_to_ptr.vmem [resolvable:$true] %s1414_s5 }
0x1bef   :  { %1228 = vrot.lane.b32.xlu1 %v1226_v2, %s1697_s10 }
0x1c61   :  { %v1229_v3 = vpop.permute.xlu1 %1228 }
0x1c62   :  { %1464 = vmatmul.msk.f32.vlgmr.msrb.gmra.mxu0 %vm123_vm9, %v1229_v3 }
0x1cdf   :  { %v1249_v8 = vpop.f32.mrf.mxu0 }
0x1ce0   :  { %v1252_v10 = vadd.f32 %v1249_v8, %v751_v9 }
0x1ce2   :  { %v1465_v11 = vmul.f32 -1.442695, %v1252_v10 }
0x1ce4   :  { %1593 = vpow2.f32 %v1465_v11 }
0x1cea   :  { %v1594_v12 = vpop.eup %1593 }
0x1ceb   :  { %v1257_v13 = vadd.f32 1.0, %v1594_v12 }
0x1ced   :  { %1595 = vrcp.f32 %v1257_v13  ;;  %v1269_v28 = vand.u32 2147483648, %v1257_v13  ;;  %v1267_v37 = vand.u32 2147483647, %v1257_v13  ;;  %vm1263_vm6 = vweird.f32 %v1257_v13 }
0x1cee   :  { %1597 = vtanh.f32 %v1252_v10 }
0x1cef   :  { %v1270_v6 = vor.u32 1.1754944e-38, %v1269_v28  ;;  %vm1268_vm8 = vcmp.eq.f32.partialorder %v1267_v37, 8.507059e+37 }
0x1cf3   :  { %v1596_v25 = vpop.eup %1595 }
0x1cf4   :  { %v1259_v26 = vmul.f32 %v1596_v25, %v1257_v13  ;;  %vm1264_vm4 = vweird.f32 %v1596_v25  ;;  %v1598_v38 = vpop.eup %1597 }
0x1cf5   :  { %vm1265_vm7 = vmor %vm1263_vm6, %vm1264_vm4 }
0x1cf6   :  { %v1260_v27 = vsub.f32 1.0, %v1259_v26 }
0x1cf8   :  { %v1261_v36 = vmul.f32 %v1596_v25, %v1260_v27 }
0x1cfa   :  { %v1262_v29 = vadd.f32 %v1596_v25, %v1261_v36 }
0x1cfc   :  { %v1266_v22 = vsel %vm1265_vm7, %v1596_v25, %v1262_v29 }
0x1cfd   :  { %v1271_v19 = vsel %vm1268_vm8, %v1270_v6, %v1266_v22 }
0x1cfe   :  { %v1273_v39 = vsel %vm1808_vm5, %v1598_v38, %v1271_v19 }
0x1cff   :  { %1276 = vrot.lane.b32.xlu2 %v1273_v39, %s1696_s3  ;;  %v1274_v31 = vmul.f32 %v1273_v39, %v1220_v5 }
0x1d59   :  { %v1277_v7 = vpop.permute.xlu2 %1276 }
0x1d5a   :  { %v1279_v30 = vmul.f32 %v1277_v7, %v1273_v39 }
0x1d5c   :  { %1281 = vrot.lane.b32.xlu0 %v1279_v30, %s1697_s10 }
0x1dce   :  { %v1282_v21 = vpop.permute.xlu0 %1281 }
0x1dcf   :  { %v1284_v32 = vadd.f32 %v1282_v21, %v1274_v31 }
0x1dd1   :  { %1599 = vtanh.f32 %v1284_v32 }
0x1dd7   :  { %v1600_v33 = vpop.eup %1599 }
0x1dd8   :  { %1287 = vrot.lane.b32.xlu1 %v1600_v33, %s1696_s3 }
0x1e4a   :  { %v1288_v60 = vpop.permute.xlu1 %1287 }
0x1e4b   :  { %v1290_v34 = vmul.f32 %v1288_v60, %v1273_v39 }
0x1e4d   :  { %1292 = vrot.lane.b32.xlu2 %v1290_v34, %s1697_s10 }
0x1ea7   :  { %v1293_v15 = vpop.permute.xlu2 %1292 }
0x1ea8   :  { %1466 = vmatmul.msk.f32.vlgmr.msra.gmra.mxu1 %vm123_vm9, %v1293_v15 }
0x1f25   :  { %v1313_v40 = vpop.f32.mrf.mxu1 }
0x1f26   :  { %v1316_v41 = vadd.f32 %v1313_v40, %v842_v35 }
0x1f28   :  { %v1467_v42 = vmul.f32 -1.442695, %v1316_v41 }
0x1f2a   :  { %1601 = vpow2.f32 %v1467_v42 }
0x1f30   :  { %v1602_v43 = vpop.eup %1601 }
0x1f31   :  { %v1321_v44 = vadd.f32 1.0, %v1602_v43 }
0x1f33   :  { %1603 = vrcp.f32 %v1321_v44  ;;  %v1333_v48 = vand.u32 2147483648, %v1321_v44  ;;  %v1331_v50 = vand.u32 2147483647, %v1321_v44  ;;  %vm1327_vm11 = vweird.f32 %v1321_v44 }
0x1f34   :  { %1605 = vtanh.f32 %v1316_v41 }
0x1f35   :  { %v1334_v53 = vor.u32 1.1754944e-38, %v1333_v48  ;;  %vm1332_vm13 = vcmp.eq.f32.partialorder %v1331_v50, 8.507059e+37 }
0x1f39   :  { %v1604_v45 = vpop.eup %1603 }
0x1f3a   :  { %v1323_v46 = vmul.f32 %v1604_v45, %v1321_v44  ;;  %vm1328_vm10 = vweird.f32 %v1604_v45  ;;  %v1606_v52 = vpop.eup %1605 }
0x1f3b   :  { %vm1329_vm12 = vmor %vm1327_vm11, %vm1328_vm10 }
0x1f3c   :  { %v1324_v47 = vsub.f32 1.0, %v1323_v46 }
0x1f3e   :  { %v1325_v49 = vmul.f32 %v1604_v45, %v1324_v47 }
0x1f40   :  { %v1326_v14 = vadd.f32 %v1604_v45, %v1325_v49 }
0x1f42   :  { %v1330_v24 = vsel %vm1329_vm12, %v1604_v45, %v1326_v14 }
0x1f43   :  { %v1335_v16 = vsel %vm1332_vm13, %v1334_v53, %v1330_v24 }
0x1f44   :  { %v1337_v54 = vsel %vm1808_vm5, %v1606_v52, %v1335_v16 }
0x1f45   :  { %1340 = vrot.lane.b32.xlu0 %v1337_v54, %s1696_s3  ;;  %v1338_v55 = vmul.f32 %v1337_v54, %v1284_v32 }
0x1fb7   :  { %v1341_v17 = vpop.permute.xlu0 %1340 }
0x1fb8   :  { %v1343_v18 = vmul.f32 %v1341_v17, %v1337_v54 }
0x1fba   :  { %1345 = vrot.lane.b32.xlu1 %v1343_v18, %s1697_s10 }
0x202c   :  { %v1346_v20 = vpop.permute.xlu1 %1345 }
0x202d   :  { %v1348_v0 = vadd.f32 %v1346_v20, %v1338_v55 }
0x202f   :  { %1607 = vtanh.f32 %v1348_v0 }
0x2035   :  { %v1608_v51 = vpop.eup %1607 }
0x2036   :  { %1351 = vrot.lane.b32.xlu2 %v1608_v51, %s1696_s3 }
0x2090   :  { %v1352_v58 = vpop.permute.xlu2 %1351 }
0x2091   :  { %v1354_v59 = vmul.f32 %v1352_v58, %v1337_v54 }
0x2093   :  { %1364 = vrot.lane.b32.xlu0 %v1354_v59, %s1697_s10 }
0x2105   :  { %v1365_v4 = vpop.permute.xlu0 %1364 }
0x2106   :  { %1468 = vmatmul.msk.f32.vlgmr.msra.gmra.mxu2 %vm123_vm9, %v1365_v4 }
0x2189   :  { %v1385_v5 = vpop.f32.mrf.mxu2 }
0x218a   :  { %v1386_v62 = vadd.f32 %v1480_v61, %v1385_v5 }
0x218c   :  { %v1469_v63 = vmul.f32 -1.442695, %v1386_v62 }
0x218e   :  { %1609 = vpow2.f32 %v1469_v63 }
0x2194   :  { %v1610_v2 = vpop.eup %1609 }
0x2195   :  { %v1391_v3 = vadd.f32 1.0, %v1610_v2 }
0x2197   :  { %1611 = vrcp.f32 %v1391_v3  ;;  %v1403_v11 = vand.u32 2147483648, %v1391_v3  ;;  %v1401_v13 = vand.u32 2147483647, %v1391_v3  ;;  %vm1397_vm9 = vweird.f32 %v1391_v3 }
0x2199   :  { %v1404_v26 = vor.u32 1.1754944e-38, %v1403_v11  ;;  %vm1402_vm0 = vcmp.eq.f32.partialorder %v1401_v13, 8.507059e+37 }
0x219d   :  { %v1612_v9 = vpop.eup %1611 }
0x219e   :  { %v1393_v8 = vmul.f32 %v1612_v9, %v1391_v3  ;;  %vm1398_vm5 = vweird.f32 %v1612_v9 }
0x219f   :  { %vm1399_vm14 = vmor %vm1397_vm9, %vm1398_vm5 }
0x21a0   :  { %v1394_v10 = vsub.f32 1.0, %v1393_v8 }
0x21a2   :  { %v1395_v12 = vmul.f32 %v1612_v9, %v1394_v10 }
0x21a4   :  { %v1396_v25 = vadd.f32 %v1612_v9, %v1395_v12 }
0x21a6   :  { %v1400_v27 = vsel %vm1399_vm14, %v1612_v9, %v1396_v25 }
0x21a7   :  { %v1405_v28 = vsel %vm1402_vm0, %v1404_v26, %v1400_v27 }
0x21a8   :  { %1408 = vst.msk [vmem:[#allocation7] sm:$0x3] %vm1407_vm15, %v1405_v28 }
0x21a9   :  { %1419 = dma.vmem_to_hbm [thread:$0]  %s1415_s5, 32, %s1417_s8, [#allocation4]  }
0x21aa   :  { %1689 = dma.done.wait [#allocation4], 32  }
0x21ab   :  { %1690 = vsyncadd [#allocation4], 4294967264 }
0x21ac   :  { %1424 = vsyncpa [#allocation3], 1 }
0x21ad   :  { %1425 = vsyncpa [#allocation6], 1 }
0x21ae   :  { %1426 = vsyncpa [#allocation4], 1 }

</bundles_post_ra>
